<compile_context>
chip_gen: v7x
topology: tpu7x:2x2x1
jax: 0.10.0
libtpu: 0.0.40
codegen_flags: <defaults>
</compile_context>

<pallas_src>
import jax
import jax.numpy as jnp
from jax.experimental import pallas as pl
from jax.experimental.pallas import tpu as pltpu


# ----------------------------------------------------------------------------
# Fused multi-layer GRU kernel (single pallas_call, grid over time chunks).
# ----------------------------------------------------------------------------
def _make_gru_kernel(num_layers, t_chunk, batch, hidden):
    n_w = 4 * num_layers

    def kernel(*refs):
        x_ref = refs[0]                      # (T*B, D_in) chunk, time-major
        w_refs = refs[1:1 + n_w]             # per layer: wx, wh_zr, wh_n, b
        out_ref = refs[1 + n_w]              # (T*B, H) chunk of last layer
        h_carry, act_scr, gx_scr = refs[2 + n_w:]

        @pl.when(pl.program_id(0) == 0)
        def _init():                          # zero hidden state of all layers
            h_carry[...] = jnp.zeros_like(h_carry)

        for l in range(num_layers):
            wx_ref, whzr_ref, whn_ref, b_ref = w_refs[4 * l:4 * l + 4]
            src = x_ref if l == 0 else act_scr
            dst = out_ref if l == num_layers - 1 else act_scr

            # (1) Chunk-wide x-side matmul for all three gates at once,
            #     biases folded in:  (T*B, Din) @ (Din, 3H) + (1, 3H).
            gx_scr[...] = (
                jnp.dot(src[...].astype(jnp.bfloat16), wx_ref[...],
                        preferred_element_type=jnp.float32)
                + b_ref[...])

            wh_zr = whzr_ref[...]             # (H, 2H) bf16, grid-invariant
            wh_n = whn_ref[...]               # (H, H)  bf16, grid-invariant

            # (2) Serial recurrence over the chunk (unrolled at trace time):
            #     only two small MXU dots per step remain on the critical path.
            h = h_carry[l]                    # (B, H) f32 carry
            for t in range(t_chunk):
                r0, r1 = t * batch, (t + 1) * batch
                g = gx_scr[r0:r1, :]          # (B, 3H): [z | r | n] preacts
                hzr = jnp.dot(h.astype(jnp.bfloat16), wh_zr,
                              preferred_element_type=jnp.float32)
                zr = jax.nn.sigmoid(g[:, :2 * hidden] + hzr)
                z = zr[:, :hidden]
                r = zr[:, hidden:]
                n = jnp.tanh(
                    g[:, 2 * hidden:]
                    + jnp.dot((r * h).astype(jnp.bfloat16), wh_n,
                              preferred_element_type=jnp.float32))
                h = (1.0 - z) * h + z * n
                dst[r0:r1, :] = h
            h_carry[l] = h

    return kernel


def _pick_t_chunk(seq_len, batch, max_chunk=32):
    t = min(seq_len, max_chunk)
    while seq_len % t:
        t -= 1
    # keep the (8,128) tiling of the (T*B, D) row blocks legal
    if (t * batch) % 8 and t != seq_len:
        t = seq_len
    return t


def fused_gru(x2d, layer_params, *, batch, t_chunk):
    """x2d: (S*B, D_in) time-major f32 -> (S*B, H) f32 (all layers fused)."""
    sb, d_in = x2d.shape
    assert sb % batch == 0
    seq = sb // batch
    assert seq % t_chunk == 0
    n_chunks = seq // t_chunk
    rows = t_chunk * batch
    num_layers = len(layer_params)
    hidden = layer_params[0]["wh_n"].shape[0]

    inputs = [x2d]
    in_specs = [pl.BlockSpec((rows, d_in), lambda c: (c, 0))]
    for i, lp in enumerate(layer_params):
        din = d_in if i == 0 else hidden
        inputs += [lp["wx"], lp["wh_zr"], lp["wh_n"], lp["b"]]
        in_specs += [
            pl.BlockSpec((din, 3 * hidden), lambda c: (0, 0)),
            pl.BlockSpec((hidden, 2 * hidden), lambda c: (0, 0)),
            pl.BlockSpec((hidden, hidden), lambda c: (0, 0)),
            pl.BlockSpec((1, 3 * hidden), lambda c: (0, 0)),
        ]

    return pl.pallas_call(
        _make_gru_kernel(num_layers, t_chunk, batch, hidden),
        out_shape=jax.ShapeDtypeStruct((sb, hidden), jnp.float32),
        grid_spec=pltpu.PrefetchScalarGridSpec(
            num_scalar_prefetch=0,
            grid=(n_chunks,),
            in_specs=in_specs,
            out_specs=pl.BlockSpec((rows, hidden), lambda c: (c, 0)),
            scratch_shapes=[
                pltpu.VMEM((num_layers, batch, hidden), jnp.float32),  # h carry
                pltpu.VMEM((rows, hidden), jnp.float32),        # inter-layer act
                pltpu.VMEM((rows, 3 * hidden), jnp.float32),    # x-side preacts
            ],
        ),
        compiler_params=pltpu.CompilerParams(
            dimension_semantics=("arbitrary",),       # time is sequential
            vmem_limit_bytes=32 * 1024 * 1024,
        ),
    )(*inputs)


# ----------------------------------------------------------------------------
# Output head: fc + LogSoftmax(dim=-1), tiled over rows.
# ----------------------------------------------------------------------------
def head_kernel(x_ref, w_ref, b_ref, o_ref):
    logits = (jnp.dot(x_ref[...].astype(jnp.bfloat16), w_ref[...],
                      preferred_element_type=jnp.float32) + b_ref[...])
    m = jnp.max(logits, axis=-1, keepdims=True)
    shifted = logits - m
    lse = jnp.log(jnp.sum(jnp.exp(shifted), axis=-1, keepdims=True))
    o_ref[...] = shifted - lse


def head(x_flat, w, b):
    """x_flat: (N, H), w: (H, O) bf16, b: (1, O) -> (N, O) log-probs (f32)."""
    n, hd = x_flat.shape
    o = w.shape[1]
    row_block = n if n <= 512 else 512
    while n % row_block:
        row_block //= 2
    # TODO(synk): for large dim_output (vocab-sized), block the O axis with a
    # two-pass / online LSE instead of a single (row_block, O) tile.
    return pl.pallas_call(
        head_kernel,
        out_shape=jax.ShapeDtypeStruct((n, o), jnp.float32),
        grid_spec=pltpu.PrefetchScalarGridSpec(
            num_scalar_prefetch=0,
            grid=(n // row_block,),
            in_specs=[pl.BlockSpec((row_block, hd), lambda i: (i, 0)),
                      pl.BlockSpec((hd, o), lambda i: (0, 0)),
                      pl.BlockSpec((1, o), lambda i: (0, 0))],
            out_specs=pl.BlockSpec((row_block, o), lambda i: (i, 0)),
        ),
        compiler_params=pltpu.CompilerParams(
            dimension_semantics=("parallel",),
            vmem_limit_bytes=32 * 1024 * 1024,
        ),
    )(x_flat, w, b)


# ----------------------------------------------------------------------------
# Parameter construction (deterministic, synthetic — no checkpoint load).
# Weight layout per layer (fused gates, pre-transposed):
#   wx    : (Din, 3H) bf16   columns = [Wxz | Wxr | Wxn]
#   wh_zr : (H, 2H)   bf16   columns = [Whz | Whr]
#   wh_n  : (H, H)    bf16
#   b     : (1, 3H)   f32    [bz | br | bn]
# ----------------------------------------------------------------------------
def init_params(key, vocab, d_in, d_hid, d_out, num_layers):
    def glorot(k, shape, dtype=jnp.float32):
        lim = (6.0 / (shape[0] + shape[1])) ** 0.5
        return jax.random.uniform(k, shape, jnp.float32, -lim, lim).astype(dtype)

    keys = jax.random.split(key, 2 + 3 * num_layers)
    ki = iter(keys)

    params = {"embedding": jax.random.normal(next(ki), (vocab, d_in),
                                             jnp.float32) * 0.1}
    layers = []
    for layer in range(num_layers):
        din = d_in if layer == 0 else d_hid
        layers.append({
            "wx": glorot(next(ki), (din, 3 * d_hid), jnp.bfloat16),
            "wh_zr": glorot(next(ki), (d_hid, 2 * d_hid), jnp.bfloat16),
            "wh_n": glorot(next(ki), (d_hid, d_hid), jnp.bfloat16),
            "b": jnp.zeros((1, 3 * d_hid), jnp.float32),
        })
    params["layers"] = layers
    params["fc_w"] = glorot(next(ki), (d_hid, d_out), jnp.bfloat16)
    params["fc_b"] = jnp.zeros((1, d_out), jnp.float32)
    return params


# ----------------------------------------------------------------------------
# Full forward pass (embedding glue + Pallas kernels).
# ----------------------------------------------------------------------------
@jax.jit
def multilayer_gru_forward(token_ids, params):
    # token_ids: (B, S) int32
    # TODO(synk): embedding lookup (gather) stays as XLA glue; the attention
    # branch of the module (attention=False here) is not implemented.
    b, s = token_ids.shape
    ids_tm = token_ids.T.reshape(-1)                       # (S*B,), time-major
    x2d = jnp.take(params["embedding"], ids_tm, axis=0)    # (S*B, D_in)

    t_chunk = _pick_t_chunk(s, b)
    h2d = fused_gru(x2d, params["layers"], batch=b, t_chunk=t_chunk)  # (S*B, H)

    logp = head(h2d, params["fc_w"], params["fc_b"])       # (S*B, O)
    # Only the small log-prob tensor is transposed back to batch-major.
    return jnp.transpose(logp.reshape(s, b, -1), (1, 0, 2))  # (B, S, O)


# ----------------------------------------------------------------------------
# Pure-JAX f32 reference (mirrors the PyTorch forward) for a sanity check.
# ----------------------------------------------------------------------------
def reference_forward(token_ids, params):
    bsz, seq = token_ids.shape
    x = jnp.take(params["embedding"], token_ids, axis=0)   # (B, S, D)
    for lp in params["layers"]:
        hd = lp["wh_n"].shape[0]
        wx = lp["wx"].astype(jnp.float32)
        whzr = lp["wh_zr"].astype(jnp.float32)
        whn = lp["wh_n"].astype(jnp.float32)
        bias = lp["b"]
        h = jnp.zeros((bsz, hd), jnp.float32)
        outs = []
        for t in range(seq):
            xt = x[:, t, :]
            gx = xt @ wx + bias
            z = jax.nn.sigmoid(gx[:, :hd] + h @ whzr[:, :hd])
            r = jax.nn.sigmoid(gx[:, hd:2 * hd] + h @ whzr[:, hd:])
            n = jnp.tanh(gx[:, 2 * hd:] + (r * h) @ whn)
            h = (1.0 - z) * h + z * n
            outs.append(h[:, None, :])
        x = jnp.concatenate(outs, axis=1)
    logits = x @ params["fc_w"].astype(jnp.float32) + params["fc_b"]
    return jax.nn.log_softmax(logits, axis=-1)


if __name__ == "__main__":
    VOCAB, D_IN, D_HID, D_OUT = 50, 16, 32, 8
    NUM_LAYERS, BATCH, SEQ = 2, 2, 8

    key = jax.random.PRNGKey(0)
    k_ids, k_params = jax.random.split(key)
    token_ids = jax.random.randint(k_ids, (BATCH, SEQ), 0, VOCAB, jnp.int32)
    params = init_params(k_params, VOCAB, D_IN, D_HID, D_OUT, NUM_LAYERS)

    out = multilayer_gru_forward(token_ids, params)
    out = jax.block_until_ready(out)

    ref = reference_forward(token_ids, params)
    assert out.shape == (BATCH, SEQ, D_OUT)
    max_diff = float(jnp.max(jnp.abs(out - ref)))
    # bf16 MXU inputs (f32 accumulation) -> loosened tolerance vs f32 reference.
    assert jnp.allclose(out, ref, atol=2e-2, rtol=2e-2), (
        f"mismatch vs reference, max abs diff {max_diff}")
    print("KERNEL_OK")
</pallas_src>

<mosaic_0001>
module attributes {stable_mosaic.version = 11 : i64} {
  func.func @head_kernel(%arg0: i32, %arg1: memref<16x32xf32, #tpu.memory_space<vmem>>, %arg2: memref<32x8xbf16, #tpu.memory_space<vmem>>, %arg3: memref<1x8xf32, #tpu.memory_space<vmem>>, %arg4: memref<16x8xf32, #tpu.memory_space<vmem>>) attributes {dimension_semantics = [#tpu.dimension_semantics<parallel>], iteration_bounds = array<i64: 1>, scalar_prefetch = 0 : i64, scratch_operands = 0 : i64, tpu.core_type = #tpu.core_type<tc>, window_params = [{transform_indices = @transform_0, window_bounds = array<i64: 16, 32>}, {pipeline_mode = #tpu.pipeline_mode<synchronous>, transform_indices = @transform_1, window_bounds = array<i64: 32, 8>}, {pipeline_mode = #tpu.pipeline_mode<synchronous>, transform_indices = @transform_2, window_bounds = array<i64: 1, 8>}, {transform_indices = @transform_3, window_bounds = array<i64: 16, 8>}]} {
    %c0 = arith.constant 0 : index
    %c0_0 = arith.constant 0 : index
    %0 = vector.load %arg1[%c0, %c0_0] : memref<16x32xf32, #tpu.memory_space<vmem>>, vector<16x32xf32>
    %1 = arith.truncf %0 : vector<16x32xf32> to vector<16x32xbf16>
    %c0_1 = arith.constant 0 : index
    %c0_2 = arith.constant 0 : index
    %2 = vector.load %arg2[%c0_1, %c0_2] : memref<32x8xbf16, #tpu.memory_space<vmem>>, vector<32x8xbf16>
    %cst = arith.constant dense<0.000000e+00> : vector<16x8xf32>
    %3 = tpu.matmul %1, %2, %cst {dimension_numbers = #tpu.dot_dimension_numbers<[1], [0], [0], [1], [0, 0, 1, 1], [], []>} : vector<16x32xbf16>, vector<32x8xbf16>, vector<16x8xf32> -> vector<16x8xf32>
    %c0_3 = arith.constant 0 : index
    %c0_4 = arith.constant 0 : index
    %4 = vector.load %arg3[%c0_3, %c0_4] : memref<1x8xf32, #tpu.memory_space<vmem>>, vector<1x8xf32>
    %5 = vector.broadcast %4 : vector<1x8xf32> to vector<16x8xf32>
    %6 = arith.addf %3, %5 : vector<16x8xf32>
    %cst_5 = arith.constant dense<0xFF800000> : vector<16xf32>
    %7 = vector.multi_reduction <maximumf>, %6, %cst_5 [1] : vector<16x8xf32> to vector<16xf32>
    %8 = vector.shape_cast %7 : vector<16xf32> to vector<16x1xf32>
    %9 = vector.broadcast %8 : vector<16x1xf32> to vector<16x8xf32>
    %10 = arith.subf %6, %9 : vector<16x8xf32>
    %11 = math.exp %10 : vector<16x8xf32>
    %cst_6 = arith.constant dense<0.000000e+00> : vector<16xf32>
    %12 = vector.multi_reduction <add>, %11, %cst_6 [1] : vector<16x8xf32> to vector<16xf32>
    %13 = vector.shape_cast %12 : vector<16xf32> to vector<16x1xf32>
    %14 = math.log %13 : vector<16x1xf32>
    %15 = vector.broadcast %14 : vector<16x1xf32> to vector<16x8xf32>
    %16 = arith.subf %10, %15 : vector<16x8xf32>
    %c0_7 = arith.constant 0 : index
    %c0_8 = arith.constant 0 : index
    %17 = vector.load %arg4[%c0_7, %c0_8] : memref<16x8xf32, #tpu.memory_space<vmem>>, vector<16x8xf32>
    tpu.vector_store %arg4[%c0_7, %c0_8], %16 {strides = array<i32>} : memref<16x8xf32, #tpu.memory_space<vmem>>, vector<16x8xf32>,
    return
  }
  func.func @transform_0(%arg0: i32) -> (i32, i32) {
    %c0_i32 = arith.constant 0 : i32
    %c0_i32_0 = arith.constant 0 : i32
    return %arg0, %c0_i32 : i32, i32
  }
  func.func @transform_1(%arg0: i32) -> (i32, i32) {
    %c0_i32 = arith.constant 0 : i32
    %c0_i32_0 = arith.constant 0 : i32
    %c0_i32_1 = arith.constant 0 : i32
    return %c0_i32, %c0_i32_0 : i32, i32
  }
  func.func @transform_2(%arg0: i32) -> (i32, i32) {
    %c0_i32 = arith.constant 0 : i32
    %c0_i32_0 = arith.constant 0 : i32
    %c0_i32_1 = arith.constant 0 : i32
    return %c0_i32, %c0_i32_0 : i32, i32
  }
  func.func @transform_3(%arg0: i32) -> (i32, i32) {
    %c0_i32 = arith.constant 0 : i32
    %c0_i32_0 = arith.constant 0 : i32
    return %arg0, %c0_i32 : i32, i32
  }
}

module attributes {stable_mosaic.version = 11 : i64} {
  func.func @kernel(%arg0: i32, %arg1: memref<16x16xf32, #tpu.memory_space<vmem>>, %arg2: memref<16x96xbf16, #tpu.memory_space<vmem>>, %arg3: memref<32x64xbf16, #tpu.memory_space<vmem>>, %arg4: memref<32x32xbf16, #tpu.memory_space<vmem>>, %arg5: memref<1x96xf32, #tpu.memory_space<vmem>>, %arg6: memref<32x96xbf16, #tpu.memory_space<vmem>>, %arg7: memref<32x64xbf16, #tpu.memory_space<vmem>>, %arg8: memref<32x32xbf16, #tpu.memory_space<vmem>>, %arg9: memref<1x96xf32, #tpu.memory_space<vmem>>, %arg10: memref<16x32xf32, #tpu.memory_space<vmem>>, %arg11: memref<2x2x32xf32, #tpu.memory_space<vmem>>, %arg12: memref<16x32xf32, #tpu.memory_space<vmem>>, %arg13: memref<16x96xf32, #tpu.memory_space<vmem>>) attributes {dimension_semantics = [#tpu.dimension_semantics<arbitrary>], iteration_bounds = array<i64: 1>, scalar_prefetch = 0 : i64, scratch_operands = 3 : i64, tpu.core_type = #tpu.core_type<tc>, window_params = [{transform_indices = @transform_0, window_bounds = array<i64: 16, 16>}, {pipeline_mode = #tpu.pipeline_mode<synchronous>, transform_indices = @transform_1, window_bounds = array<i64: 16, 96>}, {pipeline_mode = #tpu.pipeline_mode<synchronous>, transform_indices = @transform_2, window_bounds = array<i64: 32, 64>}, {pipeline_mode = #tpu.pipeline_mode<synchronous>, transform_indices = @transform_3, window_bounds = array<i64: 32, 32>}, {pipeline_mode = #tpu.pipeline_mode<synchronous>, transform_indices = @transform_4, window_bounds = array<i64: 1, 96>}, {pipeline_mode = #tpu.pipeline_mode<synchronous>, transform_indices = @transform_5, window_bounds = array<i64: 32, 96>}, {pipeline_mode = #tpu.pipeline_mode<synchronous>, transform_indices = @transform_6, window_bounds = array<i64: 32, 64>}, {pipeline_mode = #tpu.pipeline_mode<synchronous>, transform_indices = @transform_7, window_bounds = array<i64: 32, 32>}, {pipeline_mode = #tpu.pipeline_mode<synchronous>, transform_indices = @transform_8, window_bounds = array<i64: 1, 96>}, {transform_indices = @transform_9, window_bounds = array<i64: 16, 32>}]} {
    %c0_i32 = arith.constant 0 : i32
    %0 = arith.cmpi eq, %arg0, %c0_i32 : i32
    %1 = arith.extui %0 : i1 to i32
    %c0_i32_0 = arith.constant 0 : i32
    %2 = arith.cmpi ne, %1, %c0_i32_0 : i32
    scf.if %2 {
      %cst_157 = arith.constant 0.000000e+00 : f32
      %417 = vector.broadcast %cst_157 : f32 to vector<2x2x32xf32>
      %c0_158 = arith.constant 0 : index
      %c0_159 = arith.constant 0 : index
      %c0_160 = arith.constant 0 : index
      %418 = vector.load %arg11[%c0_158, %c0_159, %c0_160] : memref<2x2x32xf32, #tpu.memory_space<vmem>>, vector<2x2x32xf32>
      tpu.vector_store %arg11[%c0_158, %c0_159, %c0_160], %417 {strides = array<i32>} : memref<2x2x32xf32, #tpu.memory_space<vmem>>, vector<2x2x32xf32>,
    } else {
    }
    %c0 = arith.constant 0 : index
    %c0_1 = arith.constant 0 : index
    %3 = vector.load %arg1[%c0, %c0_1] : memref<16x16xf32, #tpu.memory_space<vmem>>, vector<16x16xf32>
    %4 = arith.truncf %3 : vector<16x16xf32> to vector<16x16xbf16>
    %c0_2 = arith.constant 0 : index
    %c0_3 = arith.constant 0 : index
    %5 = vector.load %arg2[%c0_2, %c0_3] : memref<16x96xbf16, #tpu.memory_space<vmem>>, vector<16x96xbf16>
    %cst = arith.constant dense<0.000000e+00> : vector<16x96xf32>
    %6 = tpu.matmul %4, %5, %cst {dimension_numbers = #tpu.dot_dimension_numbers<[1], [0], [0], [1], [0, 0, 1, 1], [], []>} : vector<16x16xbf16>, vector<16x96xbf16>, vector<16x96xf32> -> vector<16x96xf32>
    %c0_4 = arith.constant 0 : index
    %c0_5 = arith.constant 0 : index
    %7 = vector.load %arg5[%c0_4, %c0_5] : memref<1x96xf32, #tpu.memory_space<vmem>>, vector<1x96xf32>
    %8 = vector.broadcast %7 : vector<1x96xf32> to vector<16x96xf32>
    %9 = arith.addf %6, %8 : vector<16x96xf32>
    %c0_6 = arith.constant 0 : index
    %c0_7 = arith.constant 0 : index
    %10 = vector.load %arg13[%c0_6, %c0_7] : memref<16x96xf32, #tpu.memory_space<vmem>>, vector<16x96xf32>
    tpu.vector_store %arg13[%c0_6, %c0_7], %9 {strides = array<i32>} : memref<16x96xf32, #tpu.memory_space<vmem>>, vector<16x96xf32>,
    %c0_8 = arith.constant 0 : index
    %c0_9 = arith.constant 0 : index
    %11 = vector.load %arg3[%c0_8, %c0_9] : memref<32x64xbf16, #tpu.memory_space<vmem>>, vector<32x64xbf16>
    %c0_10 = arith.constant 0 : index
    %c0_11 = arith.constant 0 : index
    %12 = vector.load %arg4[%c0_10, %c0_11] : memref<32x32xbf16, #tpu.memory_space<vmem>>, vector<32x32xbf16>
    %c0_12 = arith.constant 0 : index
    %c0_13 = arith.constant 0 : index
    %c0_14 = arith.constant 0 : index
    %13 = vector.load %arg11[%c0_12, %c0_13, %c0_14] : memref<2x2x32xf32, #tpu.memory_space<vmem>>, vector<1x2x32xf32>
    %14 = vector.shape_cast %13 : vector<1x2x32xf32> to vector<2x32xf32>
    %c0_15 = arith.constant 0 : index
    %c0_16 = arith.constant 0 : index
    %15 = vector.load %arg13[%c0_15, %c0_16] : memref<16x96xf32, #tpu.memory_space<vmem>>, vector<2x96xf32>
    %16 = arith.truncf %14 : vector<2x32xf32> to vector<2x32xbf16>
    %cst_17 = arith.constant dense<0.000000e+00> : vector<2x64xf32>
    %17 = tpu.matmul %16, %11, %cst_17 {dimension_numbers = #tpu.dot_dimension_numbers<[1], [0], [0], [1], [0, 0, 1, 1], [], []>} : vector<2x32xbf16>, vector<32x64xbf16>, vector<2x64xf32> -> vector<2x64xf32>
    %18 = vector.extract_strided_slice %15 {offsets = [0, 0], sizes = [2, 64], strides = [1, 1]} : vector<2x96xf32> to vector<2x64xf32>
    %19 = arith.addf %18, %17 : vector<2x64xf32>
    %20 = arith.negf %19 : vector<2x64xf32>
    %21 = math.exp %20 : vector<2x64xf32>
    %cst_18 = arith.constant 1.000000e+00 : f32
    %22 = vector.broadcast %cst_18 : f32 to vector<2x64xf32>
    %23 = arith.addf %22, %21 : vector<2x64xf32>
    %24 = arith.divf %22, %23 : vector<2x64xf32>
    %25 = vector.extract_strided_slice %24 {offsets = [0, 0], sizes = [2, 32], strides = [1, 1]} : vector<2x64xf32> to vector<2x32xf32>
    %26 = vector.extract_strided_slice %24 {offsets = [0, 32], sizes = [2, 32], strides = [1, 1]} : vector<2x64xf32> to vector<2x32xf32>
    %27 = vector.extract_strided_slice %15 {offsets = [0, 64], sizes = [2, 32], strides = [1, 1]} : vector<2x96xf32> to vector<2x32xf32>
    %28 = arith.mulf %26, %14 : vector<2x32xf32>
    %29 = arith.truncf %28 : vector<2x32xf32> to vector<2x32xbf16>
    %cst_19 = arith.constant dense<0.000000e+00> : vector<2x32xf32>
    %30 = tpu.matmul %29, %12, %cst_19 {dimension_numbers = #tpu.dot_dimension_numbers<[1], [0], [0], [1], [0, 0, 1, 1], [], []>} : vector<2x32xbf16>, vector<32x32xbf16>, vector<2x32xf32> -> vector<2x32xf32>
    %31 = arith.addf %27, %30 : vector<2x32xf32>
    %32 = math.tanh %31 : vector<2x32xf32>
    %cst_20 = arith.constant 1.000000e+00 : f32
    %33 = vector.broadcast %cst_20 : f32 to vector<2x32xf32>
    %34 = arith.subf %33, %25 : vector<2x32xf32>
    %35 = arith.mulf %34, %14 : vector<2x32xf32>
    %36 = arith.mulf %25, %32 : vector<2x32xf32>
    %37 = arith.addf %35, %36 : vector<2x32xf32>
    %c0_21 = arith.constant 0 : index
    %c0_22 = arith.constant 0 : index
    %38 = vector.load %arg12[%c0_21, %c0_22] : memref<16x32xf32, #tpu.memory_space<vmem>>, vector<2x32xf32>
    tpu.vector_store %arg12[%c0_21, %c0_22], %37 {strides = array<i32>} : memref<16x32xf32, #tpu.memory_space<vmem>>, vector<2x32xf32>,
    %c2 = arith.constant 2 : index
    %c0_23 = arith.constant 0 : index
    %39 = vector.load %arg13[%c2, %c0_23] : memref<16x96xf32, #tpu.memory_space<vmem>>, vector<2x96xf32>
    %40 = arith.truncf %37 : vector<2x32xf32> to vector<2x32xbf16>
    %cst_24 = arith.constant dense<0.000000e+00> : vector<2x64xf32>
    %41 = tpu.matmul %40, %11, %cst_24 {dimension_numbers = #tpu.dot_dimension_numbers<[1], [0], [0], [1], [0, 0, 1, 1], [], []>} : vector<2x32xbf16>, vector<32x64xbf16>, vector<2x64xf32> -> vector<2x64xf32>
    %42 = vector.extract_strided_slice %39 {offsets = [0, 0], sizes = [2, 64], strides = [1, 1]} : vector<2x96xf32> to vector<2x64xf32>
    %43 = arith.addf %42, %41 : vector<2x64xf32>
    %44 = arith.negf %43 : vector<2x64xf32>
    %45 = math.exp %44 : vector<2x64xf32>
    %cst_25 = arith.constant 1.000000e+00 : f32
    %46 = vector.broadcast %cst_25 : f32 to vector<2x64xf32>
    %47 = arith.addf %46, %45 : vector<2x64xf32>
    %48 = arith.divf %46, %47 : vector<2x64xf32>
    %49 = vector.extract_strided_slice %48 {offsets = [0, 0], sizes = [2, 32], strides = [1, 1]} : vector<2x64xf32> to vector<2x32xf32>
    %50 = vector.extract_strided_slice %48 {offsets = [0, 32], sizes = [2, 32], strides = [1, 1]} : vector<2x64xf32> to vector<2x32xf32>
    %51 = vector.extract_strided_slice %39 {offsets = [0, 64], sizes = [2, 32], strides = [1, 1]} : vector<2x96xf32> to vector<2x32xf32>
    %52 = arith.mulf %50, %37 : vector<2x32xf32>
    %53 = arith.truncf %52 : vector<2x32xf32> to vector<2x32xbf16>
    %cst_26 = arith.constant dense<0.000000e+00> : vector<2x32xf32>
    %54 = tpu.matmul %53, %12, %cst_26 {dimension_numbers = #tpu.dot_dimension_numbers<[1], [0], [0], [1], [0, 0, 1, 1], [], []>} : vector<2x32xbf16>, vector<32x32xbf16>, vector<2x32xf32> -> vector<2x32xf32>
    %55 = arith.addf %51, %54 : vector<2x32xf32>
    %56 = math.tanh %55 : vector<2x32xf32>
    %cst_27 = arith.constant 1.000000e+00 : f32
    %57 = vector.broadcast %cst_27 : f32 to vector<2x32xf32>
    %58 = arith.subf %57, %49 : vector<2x32xf32>
    %59 = arith.mulf %58, %37 : vector<2x32xf32>
    %60 = arith.mulf %49, %56 : vector<2x32xf32>
    %61 = arith.addf %59, %60 : vector<2x32xf32>
    %c2_28 = arith.constant 2 : index
    %c0_29 = arith.constant 0 : index
    %62 = vector.load %arg12[%c2_28, %c0_29] : memref<16x32xf32, #tpu.memory_space<vmem>>, vector<2x32xf32>
    tpu.vector_store %arg12[%c2_28, %c0_29], %61 {strides = array<i32>} : memref<16x32xf32, #tpu.memory_space<vmem>>, vector<2x32xf32>,
    %c4 = arith.constant 4 : index
    %c0_30 = arith.constant 0 : index
    %63 = vector.load %arg13[%c4, %c0_30] : memref<16x96xf32, #tpu.memory_space<vmem>>, vector<2x96xf32>
    %64 = arith.truncf %61 : vector<2x32xf32> to vector<2x32xbf16>
    %cst_31 = arith.constant dense<0.000000e+00> : vector<2x64xf32>
    %65 = tpu.matmul %64, %11, %cst_31 {dimension_numbers = #tpu.dot_dimension_numbers<[1], [0], [0], [1], [0, 0, 1, 1], [], []>} : vector<2x32xbf16>, vector<32x64xbf16>, vector<2x64xf32> -> vector<2x64xf32>
    %66 = vector.extract_strided_slice %63 {offsets = [0, 0], sizes = [2, 64], strides = [1, 1]} : vector<2x96xf32> to vector<2x64xf32>
    %67 = arith.addf %66, %65 : vector<2x64xf32>
    %68 = arith.negf %67 : vector<2x64xf32>
    %69 = math.exp %68 : vector<2x64xf32>
    %cst_32 = arith.constant 1.000000e+00 : f32
    %70 = vector.broadcast %cst_32 : f32 to vector<2x64xf32>
    %71 = arith.addf %70, %69 : vector<2x64xf32>
    %72 = arith.divf %70, %71 : vector<2x64xf32>
    %73 = vector.extract_strided_slice %72 {offsets = [0, 0], sizes = [2, 32], strides = [1, 1]} : vector<2x64xf32> to vector<2x32xf32>
    %74 = vector.extract_strided_slice %72 {offsets = [0, 32], sizes = [2, 32], strides = [1, 1]} : vector<2x64xf32> to vector<2x32xf32>
    %75 = vector.extract_strided_slice %63 {offsets = [0, 64], sizes = [2, 32], strides = [1, 1]} : vector<2x96xf32> to vector<2x32xf32>
    %76 = arith.mulf %74, %61 : vector<2x32xf32>
    %77 = arith.truncf %76 : vector<2x32xf32> to vector<2x32xbf16>
    %cst_33 = arith.constant dense<0.000000e+00> : vector<2x32xf32>
    %78 = tpu.matmul %77, %12, %cst_33 {dimension_numbers = #tpu.dot_dimension_numbers<[1], [0], [0], [1], [0, 0, 1, 1], [], []>} : vector<2x32xbf16>, vector<32x32xbf16>, vector<2x32xf32> -> vector<2x32xf32>
    %79 = arith.addf %75, %78 : vector<2x32xf32>
    %80 = math.tanh %79 : vector<2x32xf32>
    %cst_34 = arith.constant 1.000000e+00 : f32
    %81 = vector.broadcast %cst_34 : f32 to vector<2x32xf32>
    %82 = arith.subf %81, %73 : vector<2x32xf32>
    %83 = arith.mulf %82, %61 : vector<2x32xf32>
    %84 = arith.mulf %73, %80 : vector<2x32xf32>
    %85 = arith.addf %83, %84 : vector<2x32xf32>
    %c4_35 = arith.constant 4 : index
    %c0_36 = arith.constant 0 : index
    %86 = vector.load %arg12[%c4_35, %c0_36] : memref<16x32xf32, #tpu.memory_space<vmem>>, vector<2x32xf32>
    tpu.vector_store %arg12[%c4_35, %c0_36], %85 {strides = array<i32>} : memref<16x32xf32, #tpu.memory_space<vmem>>, vector<2x32xf32>,
    %c6 = arith.constant 6 : index
    %c0_37 = arith.constant 0 : index
    %87 = vector.load %arg13[%c6, %c0_37] : memref<16x96xf32, #tpu.memory_space<vmem>>, vector<2x96xf32>
    %88 = arith.truncf %85 : vector<2x32xf32> to vector<2x32xbf16>
    %cst_38 = arith.constant dense<0.000000e+00> : vector<2x64xf32>
    %89 = tpu.matmul %88, %11, %cst_38 {dimension_numbers = #tpu.dot_dimension_numbers<[1], [0], [0], [1], [0, 0, 1, 1], [], []>} : vector<2x32xbf16>, vector<32x64xbf16>, vector<2x64xf32> -> vector<2x64xf32>
    %90 = vector.extract_strided_slice %87 {offsets = [0, 0], sizes = [2, 64], strides = [1, 1]} : vector<2x96xf32> to vector<2x64xf32>
    %91 = arith.addf %90, %89 : vector<2x64xf32>
    %92 = arith.negf %91 : vector<2x64xf32>
    %93 = math.exp %92 : vector<2x64xf32>
    %cst_39 = arith.constant 1.000000e+00 : f32
    %94 = vector.broadcast %cst_39 : f32 to vector<2x64xf32>
    %95 = arith.addf %94, %93 : vector<2x64xf32>
    %96 = arith.divf %94, %95 : vector<2x64xf32>
    %97 = vector.extract_strided_slice %96 {offsets = [0, 0], sizes = [2, 32], strides = [1, 1]} : vector<2x64xf32> to vector<2x32xf32>
    %98 = vector.extract_strided_slice %96 {offsets = [0, 32], sizes = [2, 32], strides = [1, 1]} : vector<2x64xf32> to vector<2x32xf32>
    %99 = vector.extract_strided_slice %87 {offsets = [0, 64], sizes = [2, 32], strides = [1, 1]} : vector<2x96xf32> to vector<2x32xf32>
    %100 = arith.mulf %98, %85 : vector<2x32xf32>
    %101 = arith.truncf %100 : vector<2x32xf32> to vector<2x32xbf16>
    %cst_40 = arith.constant dense<0.000000e+00> : vector<2x32xf32>
    %102 = tpu.matmul %101, %12, %cst_40 {dimension_numbers = #tpu.dot_dimension_numbers<[1], [0], [0], [1], [0, 0, 1, 1], [], []>} : vector<2x32xbf16>, vector<32x32xbf16>, vector<2x32xf32> -> vector<2x32xf32>
    %103 = arith.addf %99, %102 : vector<2x32xf32>
    %104 = math.tanh %103 : vector<2x32xf32>
    %cst_41 = arith.constant 1.000000e+00 : f32
    %105 = vector.broadcast %cst_41 : f32 to vector<2x32xf32>
    %106 = arith.subf %105, %97 : vector<2x32xf32>
    %107 = arith.mulf %106, %85 : vector<2x32xf32>
    %108 = arith.mulf %97, %104 : vector<2x32xf32>
    %109 = arith.addf %107, %108 : vector<2x32xf32>
    %c6_42 = arith.constant 6 : index
    %c0_43 = arith.constant 0 : index
    %110 = vector.load %arg12[%c6_42, %c0_43] : memref<16x32xf32, #tpu.memory_space<vmem>>, vector<2x32xf32>
    tpu.vector_store %arg12[%c6_42, %c0_43], %109 {strides = array<i32>} : memref<16x32xf32, #tpu.memory_space<vmem>>, vector<2x32xf32>,
    %c8 = arith.constant 8 : index
    %c0_44 = arith.constant 0 : index
    %111 = vector.load %arg13[%c8, %c0_44] : memref<16x96xf32, #tpu.memory_space<vmem>>, vector<2x96xf32>
    %112 = arith.truncf %109 : vector<2x32xf32> to vector<2x32xbf16>
    %cst_45 = arith.constant dense<0.000000e+00> : vector<2x64xf32>
    %113 = tpu.matmul %112, %11, %cst_45 {dimension_numbers = #tpu.dot_dimension_numbers<[1], [0], [0], [1], [0, 0, 1, 1], [], []>} : vector<2x32xbf16>, vector<32x64xbf16>, vector<2x64xf32> -> vector<2x64xf32>
    %114 = vector.extract_strided_slice %111 {offsets = [0, 0], sizes = [2, 64], strides = [1, 1]} : vector<2x96xf32> to vector<2x64xf32>
    %115 = arith.addf %114, %113 : vector<2x64xf32>
    %116 = arith.negf %115 : vector<2x64xf32>
    %117 = math.exp %116 : vector<2x64xf32>
    %cst_46 = arith.constant 1.000000e+00 : f32
    %118 = vector.broadcast %cst_46 : f32 to vector<2x64xf32>
    %119 = arith.addf %118, %117 : vector<2x64xf32>
    %120 = arith.divf %118, %119 : vector<2x64xf32>
    %121 = vector.extract_strided_slice %120 {offsets = [0, 0], sizes = [2, 32], strides = [1, 1]} : vector<2x64xf32> to vector<2x32xf32>
    %122 = vector.extract_strided_slice %120 {offsets = [0, 32], sizes = [2, 32], strides = [1, 1]} : vector<2x64xf32> to vector<2x32xf32>
    %123 = vector.extract_strided_slice %111 {offsets = [0, 64], sizes = [2, 32], strides = [1, 1]} : vector<2x96xf32> to vector<2x32xf32>
    %124 = arith.mulf %122, %109 : vector<2x32xf32>
    %125 = arith.truncf %124 : vector<2x32xf32> to vector<2x32xbf16>
    %cst_47 = arith.constant dense<0.000000e+00> : vector<2x32xf32>
    %126 = tpu.matmul %125, %12, %cst_47 {dimension_numbers = #tpu.dot_dimension_numbers<[1], [0], [0], [1], [0, 0, 1, 1], [], []>} : vector<2x32xbf16>, vector<32x32xbf16>, vector<2x32xf32> -> vector<2x32xf32>
    %127 = arith.addf %123, %126 : vector<2x32xf32>
    %128 = math.tanh %127 : vector<2x32xf32>
    %cst_48 = arith.constant 1.000000e+00 : f32
    %129 = vector.broadcast %cst_48 : f32 to vector<2x32xf32>
    %130 = arith.subf %129, %121 : vector<2x32xf32>
    %131 = arith.mulf %130, %109 : vector<2x32xf32>
    %132 = arith.mulf %121, %128 : vector<2x32xf32>
    %133 = arith.addf %131, %132 : vector<2x32xf32>
    %c8_49 = arith.constant 8 : index
    %c0_50 = arith.constant 0 : index
    %134 = vector.load %arg12[%c8_49, %c0_50] : memref<16x32xf32, #tpu.memory_space<vmem>>, vector<2x32xf32>
    tpu.vector_store %arg12[%c8_49, %c0_50], %133 {strides = array<i32>} : memref<16x32xf32, #tpu.memory_space<vmem>>, vector<2x32xf32>,
    %c10 = arith.constant 10 : index
    %c0_51 = arith.constant 0 : index
    %135 = vector.load %arg13[%c10, %c0_51] : memref<16x96xf32, #tpu.memory_space<vmem>>, vector<2x96xf32>
    %136 = arith.truncf %133 : vector<2x32xf32> to vector<2x32xbf16>
    %cst_52 = arith.constant dense<0.000000e+00> : vector<2x64xf32>
    %137 = tpu.matmul %136, %11, %cst_52 {dimension_numbers = #tpu.dot_dimension_numbers<[1], [0], [0], [1], [0, 0, 1, 1], [], []>} : vector<2x32xbf16>, vector<32x64xbf16>, vector<2x64xf32> -> vector<2x64xf32>
    %138 = vector.extract_strided_slice %135 {offsets = [0, 0], sizes = [2, 64], strides = [1, 1]} : vector<2x96xf32> to vector<2x64xf32>
    %139 = arith.addf %138, %137 : vector<2x64xf32>
    %140 = arith.negf %139 : vector<2x64xf32>
    %141 = math.exp %140 : vector<2x64xf32>
    %cst_53 = arith.constant 1.000000e+00 : f32
    %142 = vector.broadcast %cst_53 : f32 to vector<2x64xf32>
    %143 = arith.addf %142, %141 : vector<2x64xf32>
    %144 = arith.divf %142, %143 : vector<2x64xf32>
    %145 = vector.extract_strided_slice %144 {offsets = [0, 0], sizes = [2, 32], strides = [1, 1]} : vector<2x64xf32> to vector<2x32xf32>
    %146 = vector.extract_strided_slice %144 {offsets = [0, 32], sizes = [2, 32], strides = [1, 1]} : vector<2x64xf32> to vector<2x32xf32>
    %147 = vector.extract_strided_slice %135 {offsets = [0, 64], sizes = [2, 32], strides = [1, 1]} : vector<2x96xf32> to vector<2x32xf32>
    %148 = arith.mulf %146, %133 : vector<2x32xf32>
    %149 = arith.truncf %148 : vector<2x32xf32> to vector<2x32xbf16>
    %cst_54 = arith.constant dense<0.000000e+00> : vector<2x32xf32>
    %150 = tpu.matmul %149, %12, %cst_54 {dimension_numbers = #tpu.dot_dimension_numbers<[1], [0], [0], [1], [0, 0, 1, 1], [], []>} : vector<2x32xbf16>, vector<32x32xbf16>, vector<2x32xf32> -> vector<2x32xf32>
    %151 = arith.addf %147, %150 : vector<2x32xf32>
    %152 = math.tanh %151 : vector<2x32xf32>
    %cst_55 = arith.constant 1.000000e+00 : f32
    %153 = vector.broadcast %cst_55 : f32 to vector<2x32xf32>
    %154 = arith.subf %153, %145 : vector<2x32xf32>
    %155 = arith.mulf %154, %133 : vector<2x32xf32>
    %156 = arith.mulf %145, %152 : vector<2x32xf32>
    %157 = arith.addf %155, %156 : vector<2x32xf32>
    %c10_56 = arith.constant 10 : index
    %c0_57 = arith.constant 0 : index
    %158 = vector.load %arg12[%c10_56, %c0_57] : memref<16x32xf32, #tpu.memory_space<vmem>>, vector<2x32xf32>
    tpu.vector_store %arg12[%c10_56, %c0_57], %157 {strides = array<i32>} : memref<16x32xf32, #tpu.memory_space<vmem>>, vector<2x32xf32>,
    %c12 = arith.constant 12 : index
    %c0_58 = arith.constant 0 : index
    %159 = vector.load %arg13[%c12, %c0_58] : memref<16x96xf32, #tpu.memory_space<vmem>>, vector<2x96xf32>
    %160 = arith.truncf %157 : vector<2x32xf32> to vector<2x32xbf16>
    %cst_59 = arith.constant dense<0.000000e+00> : vector<2x64xf32>
    %161 = tpu.matmul %160, %11, %cst_59 {dimension_numbers = #tpu.dot_dimension_numbers<[1], [0], [0], [1], [0, 0, 1, 1], [], []>} : vector<2x32xbf16>, vector<32x64xbf16>, vector<2x64xf32> -> vector<2x64xf32>
    %162 = vector.extract_strided_slice %159 {offsets = [0, 0], sizes = [2, 64], strides = [1, 1]} : vector<2x96xf32> to vector<2x64xf32>
    %163 = arith.addf %162, %161 : vector<2x64xf32>
    %164 = arith.negf %163 : vector<2x64xf32>
    %165 = math.exp %164 : vector<2x64xf32>
    %cst_60 = arith.constant 1.000000e+00 : f32
    %166 = vector.broadcast %cst_60 : f32 to vector<2x64xf32>
    %167 = arith.addf %166, %165 : vector<2x64xf32>
    %168 = arith.divf %166, %167 : vector<2x64xf32>
    %169 = vector.extract_strided_slice %168 {offsets = [0, 0], sizes = [2, 32], strides = [1, 1]} : vector<2x64xf32> to vector<2x32xf32>
    %170 = vector.extract_strided_slice %168 {offsets = [0, 32], sizes = [2, 32], strides = [1, 1]} : vector<2x64xf32> to vector<2x32xf32>
    %171 = vector.extract_strided_slice %159 {offsets = [0, 64], sizes = [2, 32], strides = [1, 1]} : vector<2x96xf32> to vector<2x32xf32>
    %172 = arith.mulf %170, %157 : vector<2x32xf32>
    %173 = arith.truncf %172 : vector<2x32xf32> to vector<2x32xbf16>
    %cst_61 = arith.constant dense<0.000000e+00> : vector<2x32xf32>
    %174 = tpu.matmul %173, %12, %cst_61 {dimension_numbers = #tpu.dot_dimension_numbers<[1], [0], [0], [1], [0, 0, 1, 1], [], []>} : vector<2x32xbf16>, vector<32x32xbf16>, vector<2x32xf32> -> vector<2x32xf32>
    %175 = arith.addf %171, %174 : vector<2x32xf32>
    %176 = math.tanh %175 : vector<2x32xf32>
    %cst_62 = arith.constant 1.000000e+00 : f32
    %177 = vector.broadcast %cst_62 : f32 to vector<2x32xf32>
    %178 = arith.subf %177, %169 : vector<2x32xf32>
    %179 = arith.mulf %178, %157 : vector<2x32xf32>
    %180 = arith.mulf %169, %176 : vector<2x32xf32>
    %181 = arith.addf %179, %180 : vector<2x32xf32>
    %c12_63 = arith.constant 12 : index
    %c0_64 = arith.constant 0 : index
    %182 = vector.load %arg12[%c12_63, %c0_64] : memref<16x32xf32, #tpu.memory_space<vmem>>, vector<2x32xf32>
    tpu.vector_store %arg12[%c12_63, %c0_64], %181 {strides = array<i32>} : memref<16x32xf32, #tpu.memory_space<vmem>>, vector<2x32xf32>,
    %c14 = arith.constant 14 : index
    %c0_65 = arith.constant 0 : index
    %183 = vector.load %arg13[%c14, %c0_65] : memref<16x96xf32, #tpu.memory_space<vmem>>, vector<2x96xf32>
    %184 = arith.truncf %181 : vector<2x32xf32> to vector<2x32xbf16>
    %cst_66 = arith.constant dense<0.000000e+00> : vector<2x64xf32>
    %185 = tpu.matmul %184, %11, %cst_66 {dimension_numbers = #tpu.dot_dimension_numbers<[1], [0], [0], [1], [0, 0, 1, 1], [], []>} : vector<2x32xbf16>, vector<32x64xbf16>, vector<2x64xf32> -> vector<2x64xf32>
    %186 = vector.extract_strided_slice %183 {offsets = [0, 0], sizes = [2, 64], strides = [1, 1]} : vector<2x96xf32> to vector<2x64xf32>
    %187 = arith.addf %186, %185 : vector<2x64xf32>
    %188 = arith.negf %187 : vector<2x64xf32>
    %189 = math.exp %188 : vector<2x64xf32>
    %cst_67 = arith.constant 1.000000e+00 : f32
    %190 = vector.broadcast %cst_67 : f32 to vector<2x64xf32>
    %191 = arith.addf %190, %189 : vector<2x64xf32>
    %192 = arith.divf %190, %191 : vector<2x64xf32>
    %193 = vector.extract_strided_slice %192 {offsets = [0, 0], sizes = [2, 32], strides = [1, 1]} : vector<2x64xf32> to vector<2x32xf32>
    %194 = vector.extract_strided_slice %192 {offsets = [0, 32], sizes = [2, 32], strides = [1, 1]} : vector<2x64xf32> to vector<2x32xf32>
    %195 = vector.extract_strided_slice %183 {offsets = [0, 64], sizes = [2, 32], strides = [1, 1]} : vector<2x96xf32> to vector<2x32xf32>
    %196 = arith.mulf %194, %181 : vector<2x32xf32>
    %197 = arith.truncf %196 : vector<2x32xf32> to vector<2x32xbf16>
    %cst_68 = arith.constant dense<0.000000e+00> : vector<2x32xf32>
    %198 = tpu.matmul %197, %12, %cst_68 {dimension_numbers = #tpu.dot_dimension_numbers<[1], [0], [0], [1], [0, 0, 1, 1], [], []>} : vector<2x32xbf16>, vector<32x32xbf16>, vector<2x32xf32> -> vector<2x32xf32>
    %199 = arith.addf %195, %198 : vector<2x32xf32>
    %200 = math.tanh %199 : vector<2x32xf32>
    %cst_69 = arith.constant 1.000000e+00 : f32
    %201 = vector.broadcast %cst_69 : f32 to vector<2x32xf32>
    %202 = arith.subf %201, %193 : vector<2x32xf32>
    %203 = arith.mulf %202, %181 : vector<2x32xf32>
    %204 = arith.mulf %193, %200 : vector<2x32xf32>
    %205 = arith.addf %203, %204 : vector<2x32xf32>
    %c14_70 = arith.constant 14 : index
    %c0_71 = arith.constant 0 : index
    %206 = vector.load %arg12[%c14_70, %c0_71] : memref<16x32xf32, #tpu.memory_space<vmem>>, vector<2x32xf32>
    tpu.vector_store %arg12[%c14_70, %c0_71], %205 {strides = array<i32>} : memref<16x32xf32, #tpu.memory_space<vmem>>, vector<2x32xf32>,
    %c0_72 = arith.constant 0 : index
    %c0_73 = arith.constant 0 : index
    %c0_74 = arith.constant 0 : index
    %207 = vector.load %arg11[%c0_72, %c0_73, %c0_74] : memref<2x2x32xf32, #tpu.memory_space<vmem>>, vector<1x2x32xf32>
    %208 = vector.shape_cast %207 : vector<1x2x32xf32> to vector<2x32xf32>
    %209 = vector.shape_cast %205 : vector<2x32xf32> to vector<1x2x32xf32>
    tpu.vector_store %arg11[%c0_72, %c0_73, %c0_74], %209 {strides = array<i32>} : memref<2x2x32xf32, #tpu.memory_space<vmem>>, vector<1x2x32xf32>,
    %c0_75 = arith.constant 0 : index
    %c0_76 = arith.constant 0 : index
    %210 = vector.load %arg12[%c0_75, %c0_76] : memref<16x32xf32, #tpu.memory_space<vmem>>, vector<16x32xf32>
    %211 = arith.truncf %210 : vector<16x32xf32> to vector<16x32xbf16>
    %c0_77 = arith.constant 0 : index
    %c0_78 = arith.constant 0 : index
    %212 = vector.load %arg6[%c0_77, %c0_78] : memref<32x96xbf16, #tpu.memory_space<vmem>>, vector<32x96xbf16>
    %cst_79 = arith.constant dense<0.000000e+00> : vector<16x96xf32>
    %213 = tpu.matmul %211, %212, %cst_79 {dimension_numbers = #tpu.dot_dimension_numbers<[1], [0], [0], [1], [0, 0, 1, 1], [], []>} : vector<16x32xbf16>, vector<32x96xbf16>, vector<16x96xf32> -> vector<16x96xf32>
    %c0_80 = arith.constant 0 : index
    %c0_81 = arith.constant 0 : index
    %214 = vector.load %arg9[%c0_80, %c0_81] : memref<1x96xf32, #tpu.memory_space<vmem>>, vector<1x96xf32>
    %215 = vector.broadcast %214 : vector<1x96xf32> to vector<16x96xf32>
    %216 = arith.addf %213, %215 : vector<16x96xf32>
    %c0_82 = arith.constant 0 : index
    %c0_83 = arith.constant 0 : index
    %217 = vector.load %arg13[%c0_82, %c0_83] : memref<16x96xf32, #tpu.memory_space<vmem>>, vector<16x96xf32>
    tpu.vector_store %arg13[%c0_82, %c0_83], %216 {strides = array<i32>} : memref<16x96xf32, #tpu.memory_space<vmem>>, vector<16x96xf32>,
    %c0_84 = arith.constant 0 : index
    %c0_85 = arith.constant 0 : index
    %218 = vector.load %arg7[%c0_84, %c0_85] : memref<32x64xbf16, #tpu.memory_space<vmem>>, vector<32x64xbf16>
    %c0_86 = arith.constant 0 : index
    %c0_87 = arith.constant 0 : index
    %219 = vector.load %arg8[%c0_86, %c0_87] : memref<32x32xbf16, #tpu.memory_space<vmem>>, vector<32x32xbf16>
    %c1 = arith.constant 1 : index
    %c0_88 = arith.constant 0 : index
    %c0_89 = arith.constant 0 : index
    %220 = vector.load %arg11[%c1, %c0_88, %c0_89] : memref<2x2x32xf32, #tpu.memory_space<vmem>>, vector<1x2x32xf32>
    %221 = vector.shape_cast %220 : vector<1x2x32xf32> to vector<2x32xf32>
    %c0_90 = arith.constant 0 : index
    %c0_91 = arith.constant 0 : index
    %222 = vector.load %arg13[%c0_90, %c0_91] : memref<16x96xf32, #tpu.memory_space<vmem>>, vector<2x96xf32>
    %223 = arith.truncf %221 : vector<2x32xf32> to vector<2x32xbf16>
    %cst_92 = arith.constant dense<0.000000e+00> : vector<2x64xf32>
    %224 = tpu.matmul %223, %218, %cst_92 {dimension_numbers = #tpu.dot_dimension_numbers<[1], [0], [0], [1], [0, 0, 1, 1], [], []>} : vector<2x32xbf16>, vector<32x64xbf16>, vector<2x64xf32> -> vector<2x64xf32>
    %225 = vector.extract_strided_slice %222 {offsets = [0, 0], sizes = [2, 64], strides = [1, 1]} : vector<2x96xf32> to vector<2x64xf32>
    %226 = arith.addf %225, %224 : vector<2x64xf32>
    %227 = arith.negf %226 : vector<2x64xf32>
    %228 = math.exp %227 : vector<2x64xf32>
    %cst_93 = arith.constant 1.000000e+00 : f32
    %229 = vector.broadcast %cst_93 : f32 to vector<2x64xf32>
    %230 = arith.addf %229, %228 : vector<2x64xf32>
    %231 = arith.divf %229, %230 : vector<2x64xf32>
    %232 = vector.extract_strided_slice %231 {offsets = [0, 0], sizes = [2, 32], strides = [1, 1]} : vector<2x64xf32> to vector<2x32xf32>
    %233 = vector.extract_strided_slice %231 {offsets = [0, 32], sizes = [2, 32], strides = [1, 1]} : vector<2x64xf32> to vector<2x32xf32>
    %234 = vector.extract_strided_slice %222 {offsets = [0, 64], sizes = [2, 32], strides = [1, 1]} : vector<2x96xf32> to vector<2x32xf32>
    %235 = arith.mulf %233, %221 : vector<2x32xf32>
    %236 = arith.truncf %235 : vector<2x32xf32> to vector<2x32xbf16>
    %cst_94 = arith.constant dense<0.000000e+00> : vector<2x32xf32>
    %237 = tpu.matmul %236, %219, %cst_94 {dimension_numbers = #tpu.dot_dimension_numbers<[1], [0], [0], [1], [0, 0, 1, 1], [], []>} : vector<2x32xbf16>, vector<32x32xbf16>, vector<2x32xf32> -> vector<2x32xf32>
    %238 = arith.addf %234, %237 : vector<2x32xf32>
    %239 = math.tanh %238 : vector<2x32xf32>
    %cst_95 = arith.constant 1.000000e+00 : f32
    %240 = vector.broadcast %cst_95 : f32 to vector<2x32xf32>
    %241 = arith.subf %240, %232 : vector<2x32xf32>
    %242 = arith.mulf %241, %221 : vector<2x32xf32>
    %243 = arith.mulf %232, %239 : vector<2x32xf32>
    %244 = arith.addf %242, %243 : vector<2x32xf32>
    %c0_96 = arith.constant 0 : index
    %c0_97 = arith.constant 0 : index
    %245 = vector.load %arg10[%c0_96, %c0_97] : memref<16x32xf32, #tpu.memory_space<vmem>>, vector<2x32xf32>
    tpu.vector_store %arg10[%c0_96, %c0_97], %244 {strides = array<i32>} : memref<16x32xf32, #tpu.memory_space<vmem>>, vector<2x32xf32>,
    %c2_98 = arith.constant 2 : index
    %c0_99 = arith.constant 0 : index
    %246 = vector.load %arg13[%c2_98, %c0_99] : memref<16x96xf32, #tpu.memory_space<vmem>>, vector<2x96xf32>
    %247 = arith.truncf %244 : vector<2x32xf32> to vector<2x32xbf16>
    %cst_100 = arith.constant dense<0.000000e+00> : vector<2x64xf32>
    %248 = tpu.matmul %247, %218, %cst_100 {dimension_numbers = #tpu.dot_dimension_numbers<[1], [0], [0], [1], [0, 0, 1, 1], [], []>} : vector<2x32xbf16>, vector<32x64xbf16>, vector<2x64xf32> -> vector<2x64xf32>
    %249 = vector.extract_strided_slice %246 {offsets = [0, 0], sizes = [2, 64], strides = [1, 1]} : vector<2x96xf32> to vector<2x64xf32>
    %250 = arith.addf %249, %248 : vector<2x64xf32>
    %251 = arith.negf %250 : vector<2x64xf32>
    %252 = math.exp %251 : vector<2x64xf32>
    %cst_101 = arith.constant 1.000000e+00 : f32
    %253 = vector.broadcast %cst_101 : f32 to vector<2x64xf32>
    %254 = arith.addf %253, %252 : vector<2x64xf32>
    %255 = arith.divf %253, %254 : vector<2x64xf32>
    %256 = vector.extract_strided_slice %255 {offsets = [0, 0], sizes = [2, 32], strides = [1, 1]} : vector<2x64xf32> to vector<2x32xf32>
    %257 = vector.extract_strided_slice %255 {offsets = [0, 32], sizes = [2, 32], strides = [1, 1]} : vector<2x64xf32> to vector<2x32xf32>
    %258 = vector.extract_strided_slice %246 {offsets = [0, 64], sizes = [2, 32], strides = [1, 1]} : vector<2x96xf32> to vector<2x32xf32>
    %259 = arith.mulf %257, %244 : vector<2x32xf32>
    %260 = arith.truncf %259 : vector<2x32xf32> to vector<2x32xbf16>
    %cst_102 = arith.constant dense<0.000000e+00> : vector<2x32xf32>
    %261 = tpu.matmul %260, %219, %cst_102 {dimension_numbers = #tpu.dot_dimension_numbers<[1], [0], [0], [1], [0, 0, 1, 1], [], []>} : vector<2x32xbf16>, vector<32x32xbf16>, vector<2x32xf32> -> vector<2x32xf32>
    %262 = arith.addf %258, %261 : vector<2x32xf32>
    %263 = math.tanh %262 : vector<2x32xf32>
    %cst_103 = arith.constant 1.000000e+00 : f32
    %264 = vector.broadcast %cst_103 : f32 to vector<2x32xf32>
    %265 = arith.subf %264, %256 : vector<2x32xf32>
    %266 = arith.mulf %265, %244 : vector<2x32xf32>
    %267 = arith.mulf %256, %263 : vector<2x32xf32>
    %268 = arith.addf %266, %267 : vector<2x32xf32>
    %c2_104 = arith.constant 2 : index
    %c0_105 = arith.constant 0 : index
    %269 = vector.load %arg10[%c2_104, %c0_105] : memref<16x32xf32, #tpu.memory_space<vmem>>, vector<2x32xf32>
    tpu.vector_store %arg10[%c2_104, %c0_105], %268 {strides = array<i32>} : memref<16x32xf32, #tpu.memory_space<vmem>>, vector<2x32xf32>,
    %c4_106 = arith.constant 4 : index
    %c0_107 = arith.constant 0 : index
    %270 = vector.load %arg13[%c4_106, %c0_107] : memref<16x96xf32, #tpu.memory_space<vmem>>, vector<2x96xf32>
    %271 = arith.truncf %268 : vector<2x32xf32> to vector<2x32xbf16>
    %cst_108 = arith.constant dense<0.000000e+00> : vector<2x64xf32>
    %272 = tpu.matmul %271, %218, %cst_108 {dimension_numbers = #tpu.dot_dimension_numbers<[1], [0], [0], [1], [0, 0, 1, 1], [], []>} : vector<2x32xbf16>, vector<32x64xbf16>, vector<2x64xf32> -> vector<2x64xf32>
    %273 = vector.extract_strided_slice %270 {offsets = [0, 0], sizes = [2, 64], strides = [1, 1]} : vector<2x96xf32> to vector<2x64xf32>
    %274 = arith.addf %273, %272 : vector<2x64xf32>
    %275 = arith.negf %274 : vector<2x64xf32>
    %276 = math.exp %275 : vector<2x64xf32>
    %cst_109 = arith.constant 1.000000e+00 : f32
    %277 = vector.broadcast %cst_109 : f32 to vector<2x64xf32>
    %278 = arith.addf %277, %276 : vector<2x64xf32>
    %279 = arith.divf %277, %278 : vector<2x64xf32>
    %280 = vector.extract_strided_slice %279 {offsets = [0, 0], sizes = [2, 32], strides = [1, 1]} : vector<2x64xf32> to vector<2x32xf32>
    %281 = vector.extract_strided_slice %279 {offsets = [0, 32], sizes = [2, 32], strides = [1, 1]} : vector<2x64xf32> to vector<2x32xf32>
    %282 = vector.extract_strided_slice %270 {offsets = [0, 64], sizes = [2, 32], strides = [1, 1]} : vector<2x96xf32> to vector<2x32xf32>
    %283 = arith.mulf %281, %268 : vector<2x32xf32>
    %284 = arith.truncf %283 : vector<2x32xf32> to vector<2x32xbf16>
    %cst_110 = arith.constant dense<0.000000e+00> : vector<2x32xf32>
    %285 = tpu.matmul %284, %219, %cst_110 {dimension_numbers = #tpu.dot_dimension_numbers<[1], [0], [0], [1], [0, 0, 1, 1], [], []>} : vector<2x32xbf16>, vector<32x32xbf16>, vector<2x32xf32> -> vector<2x32xf32>
    %286 = arith.addf %282, %285 : vector<2x32xf32>
    %287 = math.tanh %286 : vector<2x32xf32>
    %cst_111 = arith.constant 1.000000e+00 : f32
    %288 = vector.broadcast %cst_111 : f32 to vector<2x32xf32>
    %289 = arith.subf %288, %280 : vector<2x32xf32>
    %290 = arith.mulf %289, %268 : vector<2x32xf32>
    %291 = arith.mulf %280, %287 : vector<2x32xf32>
    %292 = arith.addf %290, %291 : vector<2x32xf32>
    %c4_112 = arith.constant 4 : index
    %c0_113 = arith.constant 0 : index
    %293 = vector.load %arg10[%c4_112, %c0_113] : memref<16x32xf32, #tpu.memory_space<vmem>>, vector<2x32xf32>
    tpu.vector_store %arg10[%c4_112, %c0_113], %292 {strides = array<i32>} : memref<16x32xf32, #tpu.memory_space<vmem>>, vector<2x32xf32>,
    %c6_114 = arith.constant 6 : index
    %c0_115 = arith.constant 0 : index
    %294 = vector.load %arg13[%c6_114, %c0_115] : memref<16x96xf32, #tpu.memory_space<vmem>>, vector<2x96xf32>
    %295 = arith.truncf %292 : vector<2x32xf32> to vector<2x32xbf16>
    %cst_116 = arith.constant dense<0.000000e+00> : vector<2x64xf32>
    %296 = tpu.matmul %295, %218, %cst_116 {dimension_numbers = #tpu.dot_dimension_numbers<[1], [0], [0], [1], [0, 0, 1, 1], [], []>} : vector<2x32xbf16>, vector<32x64xbf16>, vector<2x64xf32> -> vector<2x64xf32>
    %297 = vector.extract_strided_slice %294 {offsets = [0, 0], sizes = [2, 64], strides = [1, 1]} : vector<2x96xf32> to vector<2x64xf32>
    %298 = arith.addf %297, %296 : vector<2x64xf32>
    %299 = arith.negf %298 : vector<2x64xf32>
    %300 = math.exp %299 : vector<2x64xf32>
    %cst_117 = arith.constant 1.000000e+00 : f32
    %301 = vector.broadcast %cst_117 : f32 to vector<2x64xf32>
    %302 = arith.addf %301, %300 : vector<2x64xf32>
    %303 = arith.divf %301, %302 : vector<2x64xf32>
    %304 = vector.extract_strided_slice %303 {offsets = [0, 0], sizes = [2, 32], strides = [1, 1]} : vector<2x64xf32> to vector<2x32xf32>
    %305 = vector.extract_strided_slice %303 {offsets = [0, 32], sizes = [2, 32], strides = [1, 1]} : vector<2x64xf32> to vector<2x32xf32>
    %306 = vector.extract_strided_slice %294 {offsets = [0, 64], sizes = [2, 32], strides = [1, 1]} : vector<2x96xf32> to vector<2x32xf32>
    %307 = arith.mulf %305, %292 : vector<2x32xf32>
    %308 = arith.truncf %307 : vector<2x32xf32> to vector<2x32xbf16>
    %cst_118 = arith.constant dense<0.000000e+00> : vector<2x32xf32>
    %309 = tpu.matmul %308, %219, %cst_118 {dimension_numbers = #tpu.dot_dimension_numbers<[1], [0], [0], [1], [0, 0, 1, 1], [], []>} : vector<2x32xbf16>, vector<32x32xbf16>, vector<2x32xf32> -> vector<2x32xf32>
    %310 = arith.addf %306, %309 : vector<2x32xf32>
    %311 = math.tanh %310 : vector<2x32xf32>
    %cst_119 = arith.constant 1.000000e+00 : f32
    %312 = vector.broadcast %cst_119 : f32 to vector<2x32xf32>
    %313 = arith.subf %312, %304 : vector<2x32xf32>
    %314 = arith.mulf %313, %292 : vector<2x32xf32>
    %315 = arith.mulf %304, %311 : vector<2x32xf32>
    %316 = arith.addf %314, %315 : vector<2x32xf32>
    %c6_120 = arith.constant 6 : index
    %c0_121 = arith.constant 0 : index
    %317 = vector.load %arg10[%c6_120, %c0_121] : memref<16x32xf32, #tpu.memory_space<vmem>>, vector<2x32xf32>
    tpu.vector_store %arg10[%c6_120, %c0_121], %316 {strides = array<i32>} : memref<16x32xf32, #tpu.memory_space<vmem>>, vector<2x32xf32>,
    %c8_122 = arith.constant 8 : index
    %c0_123 = arith.constant 0 : index
    %318 = vector.load %arg13[%c8_122, %c0_123] : memref<16x96xf32, #tpu.memory_space<vmem>>, vector<2x96xf32>
    %319 = arith.truncf %316 : vector<2x32xf32> to vector<2x32xbf16>
    %cst_124 = arith.constant dense<0.000000e+00> : vector<2x64xf32>
    %320 = tpu.matmul %319, %218, %cst_124 {dimension_numbers = #tpu.dot_dimension_numbers<[1], [0], [0], [1], [0, 0, 1, 1], [], []>} : vector<2x32xbf16>, vector<32x64xbf16>, vector<2x64xf32> -> vector<2x64xf32>
    %321 = vector.extract_strided_slice %318 {offsets = [0, 0], sizes = [2, 64], strides = [1, 1]} : vector<2x96xf32> to vector<2x64xf32>
    %322 = arith.addf %321, %320 : vector<2x64xf32>
    %323 = arith.negf %322 : vector<2x64xf32>
    %324 = math.exp %323 : vector<2x64xf32>
    %cst_125 = arith.constant 1.000000e+00 : f32
    %325 = vector.broadcast %cst_125 : f32 to vector<2x64xf32>
    %326 = arith.addf %325, %324 : vector<2x64xf32>
    %327 = arith.divf %325, %326 : vector<2x64xf32>
    %328 = vector.extract_strided_slice %327 {offsets = [0, 0], sizes = [2, 32], strides = [1, 1]} : vector<2x64xf32> to vector<2x32xf32>
    %329 = vector.extract_strided_slice %327 {offsets = [0, 32], sizes = [2, 32], strides = [1, 1]} : vector<2x64xf32> to vector<2x32xf32>
    %330 = vector.extract_strided_slice %318 {offsets = [0, 64], sizes = [2, 32], strides = [1, 1]} : vector<2x96xf32> to vector<2x32xf32>
    %331 = arith.mulf %329, %316 : vector<2x32xf32>
    %332 = arith.truncf %331 : vector<2x32xf32> to vector<2x32xbf16>
    %cst_126 = arith.constant dense<0.000000e+00> : vector<2x32xf32>
    %333 = tpu.matmul %332, %219, %cst_126 {dimension_numbers = #tpu.dot_dimension_numbers<[1], [0], [0], [1], [0, 0, 1, 1], [], []>} : vector<2x32xbf16>, vector<32x32xbf16>, vector<2x32xf32> -> vector<2x32xf32>
    %334 = arith.addf %330, %333 : vector<2x32xf32>
    %335 = math.tanh %334 : vector<2x32xf32>
    %cst_127 = arith.constant 1.000000e+00 : f32
    %336 = vector.broadcast %cst_127 : f32 to vector<2x32xf32>
    %337 = arith.subf %336, %328 : vector<2x32xf32>
    %338 = arith.mulf %337, %316 : vector<2x32xf32>
    %339 = arith.mulf %328, %335 : vector<2x32xf32>
    %340 = arith.addf %338, %339 : vector<2x32xf32>
    %c8_128 = arith.constant 8 : index
    %c0_129 = arith.constant 0 : index
    %341 = vector.load %arg10[%c8_128, %c0_129] : memref<16x32xf32, #tpu.memory_space<vmem>>, vector<2x32xf32>
    tpu.vector_store %arg10[%c8_128, %c0_129], %340 {strides = array<i32>} : memref<16x32xf32, #tpu.memory_space<vmem>>, vector<2x32xf32>,
    %c10_130 = arith.constant 10 : index
    %c0_131 = arith.constant 0 : index
    %342 = vector.load %arg13[%c10_130, %c0_131] : memref<16x96xf32, #tpu.memory_space<vmem>>, vector<2x96xf32>
    %343 = arith.truncf %340 : vector<2x32xf32> to vector<2x32xbf16>
    %cst_132 = arith.constant dense<0.000000e+00> : vector<2x64xf32>
    %344 = tpu.matmul %343, %218, %cst_132 {dimension_numbers = #tpu.dot_dimension_numbers<[1], [0], [0], [1], [0, 0, 1, 1], [], []>} : vector<2x32xbf16>, vector<32x64xbf16>, vector<2x64xf32> -> vector<2x64xf32>
    %345 = vector.extract_strided_slice %342 {offsets = [0, 0], sizes = [2, 64], strides = [1, 1]} : vector<2x96xf32> to vector<2x64xf32>
    %346 = arith.addf %345, %344 : vector<2x64xf32>
    %347 = arith.negf %346 : vector<2x64xf32>
    %348 = math.exp %347 : vector<2x64xf32>
    %cst_133 = arith.constant 1.000000e+00 : f32
    %349 = vector.broadcast %cst_133 : f32 to vector<2x64xf32>
    %350 = arith.addf %349, %348 : vector<2x64xf32>
    %351 = arith.divf %349, %350 : vector<2x64xf32>
    %352 = vector.extract_strided_slice %351 {offsets = [0, 0], sizes = [2, 32], strides = [1, 1]} : vector<2x64xf32> to vector<2x32xf32>
    %353 = vector.extract_strided_slice %351 {offsets = [0, 32], sizes = [2, 32], strides = [1, 1]} : vector<2x64xf32> to vector<2x32xf32>
    %354 = vector.extract_strided_slice %342 {offsets = [0, 64], sizes = [2, 32], strides = [1, 1]} : vector<2x96xf32> to vector<2x32xf32>
    %355 = arith.mulf %353, %340 : vector<2x32xf32>
    %356 = arith.truncf %355 : vector<2x32xf32> to vector<2x32xbf16>
    %cst_134 = arith.constant dense<0.000000e+00> : vector<2x32xf32>
    %357 = tpu.matmul %356, %219, %cst_134 {dimension_numbers = #tpu.dot_dimension_numbers<[1], [0], [0], [1], [0, 0, 1, 1], [], []>} : vector<2x32xbf16>, vector<32x32xbf16>, vector<2x32xf32> -> vector<2x32xf32>
    %358 = arith.addf %354, %357 : vector<2x32xf32>
    %359 = math.tanh %358 : vector<2x32xf32>
    %cst_135 = arith.constant 1.000000e+00 : f32
    %360 = vector.broadcast %cst_135 : f32 to vector<2x32xf32>
    %361 = arith.subf %360, %352 : vector<2x32xf32>
    %362 = arith.mulf %361, %340 : vector<2x32xf32>
    %363 = arith.mulf %352, %359 : vector<2x32xf32>
    %364 = arith.addf %362, %363 : vector<2x32xf32>
    %c10_136 = arith.constant 10 : index
    %c0_137 = arith.constant 0 : index
    %365 = vector.load %arg10[%c10_136, %c0_137] : memref<16x32xf32, #tpu.memory_space<vmem>>, vector<2x32xf32>
    tpu.vector_store %arg10[%c10_136, %c0_137], %364 {strides = array<i32>} : memref<16x32xf32, #tpu.memory_space<vmem>>, vector<2x32xf32>,
    %c12_138 = arith.constant 12 : index
    %c0_139 = arith.constant 0 : index
    %366 = vector.load %arg13[%c12_138, %c0_139] : memref<16x96xf32, #tpu.memory_space<vmem>>, vector<2x96xf32>
    %367 = arith.truncf %364 : vector<2x32xf32> to vector<2x32xbf16>
    %cst_140 = arith.constant dense<0.000000e+00> : vector<2x64xf32>
    %368 = tpu.matmul %367, %218, %cst_140 {dimension_numbers = #tpu.dot_dimension_numbers<[1], [0], [0], [1], [0, 0, 1, 1], [], []>} : vector<2x32xbf16>, vector<32x64xbf16>, vector<2x64xf32> -> vector<2x64xf32>
    %369 = vector.extract_strided_slice %366 {offsets = [0, 0], sizes = [2, 64], strides = [1, 1]} : vector<2x96xf32> to vector<2x64xf32>
    %370 = arith.addf %369, %368 : vector<2x64xf32>
    %371 = arith.negf %370 : vector<2x64xf32>
    %372 = math.exp %371 : vector<2x64xf32>
    %cst_141 = arith.constant 1.000000e+00 : f32
    %373 = vector.broadcast %cst_141 : f32 to vector<2x64xf32>
    %374 = arith.addf %373, %372 : vector<2x64xf32>
    %375 = arith.divf %373, %374 : vector<2x64xf32>
    %376 = vector.extract_strided_slice %375 {offsets = [0, 0], sizes = [2, 32], strides = [1, 1]} : vector<2x64xf32> to vector<2x32xf32>
    %377 = vector.extract_strided_slice %375 {offsets = [0, 32], sizes = [2, 32], strides = [1, 1]} : vector<2x64xf32> to vector<2x32xf32>
    %378 = vector.extract_strided_slice %366 {offsets = [0, 64], sizes = [2, 32], strides = [1, 1]} : vector<2x96xf32> to vector<2x32xf32>
    %379 = arith.mulf %377, %364 : vector<2x32xf32>
    %380 = arith.truncf %379 : vector<2x32xf32> to vector<2x32xbf16>
    %cst_142 = arith.constant dense<0.000000e+00> : vector<2x32xf32>
    %381 = tpu.matmul %380, %219, %cst_142 {dimension_numbers = #tpu.dot_dimension_numbers<[1], [0], [0], [1], [0, 0, 1, 1], [], []>} : vector<2x32xbf16>, vector<32x32xbf16>, vector<2x32xf32> -> vector<2x32xf32>
    %382 = arith.addf %378, %381 : vector<2x32xf32>
    %383 = math.tanh %382 : vector<2x32xf32>
    %cst_143 = arith.constant 1.000000e+00 : f32
    %384 = vector.broadcast %cst_143 : f32 to vector<2x32xf32>
    %385 = arith.subf %384, %376 : vector<2x32xf32>
    %386 = arith.mulf %385, %364 : vector<2x32xf32>
    %387 = arith.mulf %376, %383 : vector<2x32xf32>
    %388 = arith.addf %386, %387 : vector<2x32xf32>
    %c12_144 = arith.constant 12 : index
    %c0_145 = arith.constant 0 : index
    %389 = vector.load %arg10[%c12_144, %c0_145] : memref<16x32xf32, #tpu.memory_space<vmem>>, vector<2x32xf32>
    tpu.vector_store %arg10[%c12_144, %c0_145], %388 {strides = array<i32>} : memref<16x32xf32, #tpu.memory_space<vmem>>, vector<2x32xf32>,
    %c14_146 = arith.constant 14 : index
    %c0_147 = arith.constant 0 : index
    %390 = vector.load %arg13[%c14_146, %c0_147] : memref<16x96xf32, #tpu.memory_space<vmem>>, vector<2x96xf32>
    %391 = arith.truncf %388 : vector<2x32xf32> to vector<2x32xbf16>
    %cst_148 = arith.constant dense<0.000000e+00> : vector<2x64xf32>
    %392 = tpu.matmul %391, %218, %cst_148 {dimension_numbers = #tpu.dot_dimension_numbers<[1], [0], [0], [1], [0, 0, 1, 1], [], []>} : vector<2x32xbf16>, vector<32x64xbf16>, vector<2x64xf32> -> vector<2x64xf32>
    %393 = vector.extract_strided_slice %390 {offsets = [0, 0], sizes = [2, 64], strides = [1, 1]} : vector<2x96xf32> to vector<2x64xf32>
    %394 = arith.addf %393, %392 : vector<2x64xf32>
    %395 = arith.negf %394 : vector<2x64xf32>
    %396 = math.exp %395 : vector<2x64xf32>
    %cst_149 = arith.constant 1.000000e+00 : f32
    %397 = vector.broadcast %cst_149 : f32 to vector<2x64xf32>
    %398 = arith.addf %397, %396 : vector<2x64xf32>
    %399 = arith.divf %397, %398 : vector<2x64xf32>
    %400 = vector.extract_strided_slice %399 {offsets = [0, 0], sizes = [2, 32], strides = [1, 1]} : vector<2x64xf32> to vector<2x32xf32>
    %401 = vector.extract_strided_slice %399 {offsets = [0, 32], sizes = [2, 32], strides = [1, 1]} : vector<2x64xf32> to vector<2x32xf32>
    %402 = vector.extract_strided_slice %390 {offsets = [0, 64], sizes = [2, 32], strides = [1, 1]} : vector<2x96xf32> to vector<2x32xf32>
    %403 = arith.mulf %401, %388 : vector<2x32xf32>
    %404 = arith.truncf %403 : vector<2x32xf32> to vector<2x32xbf16>
    %cst_150 = arith.constant dense<0.000000e+00> : vector<2x32xf32>
    %405 = tpu.matmul %404, %219, %cst_150 {dimension_numbers = #tpu.dot_dimension_numbers<[1], [0], [0], [1], [0, 0, 1, 1], [], []>} : vector<2x32xbf16>, vector<32x32xbf16>, vector<2x32xf32> -> vector<2x32xf32>
    %406 = arith.addf %402, %405 : vector<2x32xf32>
    %407 = math.tanh %406 : vector<2x32xf32>
    %cst_151 = arith.constant 1.000000e+00 : f32
    %408 = vector.broadcast %cst_151 : f32 to vector<2x32xf32>
    %409 = arith.subf %408, %400 : vector<2x32xf32>
    %410 = arith.mulf %409, %388 : vector<2x32xf32>
    %411 = arith.mulf %400, %407 : vector<2x32xf32>
    %412 = arith.addf %410, %411 : vector<2x32xf32>
    %c14_152 = arith.constant 14 : index
    %c0_153 = arith.constant 0 : index
    %413 = vector.load %arg10[%c14_152, %c0_153] : memref<16x32xf32, #tpu.memory_space<vmem>>, vector<2x32xf32>
    tpu.vector_store %arg10[%c14_152, %c0_153], %412 {strides = array<i32>} : memref<16x32xf32, #tpu.memory_space<vmem>>, vector<2x32xf32>,
    %c1_154 = arith.constant 1 : index
    %c0_155 = arith.constant 0 : index
    %c0_156 = arith.constant 0 : index
    %414 = vector.load %arg11[%c1_154, %c0_155, %c0_156] : memref<2x2x32xf32, #tpu.memory_space<vmem>>, vector<1x2x32xf32>
    %415 = vector.shape_cast %414 : vector<1x2x32xf32> to vector<2x32xf32>
    %416 = vector.shape_cast %412 : vector<2x32xf32> to vector<1x2x32xf32>
    tpu.vector_store %arg11[%c1_154, %c0_155, %c0_156], %416 {strides = array<i32>} : memref<2x2x32xf32, #tpu.memory_space<vmem>>, vector<1x2x32xf32>,
    return
  }
  func.func @transform_0(%arg0: i32) -> (i32, i32) {
    %c0_i32 = arith.constant 0 : i32
    %c0_i32_0 = arith.constant 0 : i32
    return %arg0, %c0_i32 : i32, i32
  }
  func.func @transform_1(%arg0: i32) -> (i32, i32) {
    %c0_i32 = arith.constant 0 : i32
    %c0_i32_0 = arith.constant 0 : i32
    %c0_i32_1 = arith.constant 0 : i32
    return %c0_i32, %c0_i32_0 : i32, i32
  }
  func.func @transform_2(%arg0: i32) -> (i32, i32) {
    %c0_i32 = arith.constant 0 : i32
    %c0_i32_0 = arith.constant 0 : i32
    %c0_i32_1 = arith.constant 0 : i32
    return %c0_i32, %c0_i32_0 : i32, i32
  }
  func.func @transform_3(%arg0: i32) -> (i32, i32) {
    %c0_i32 = arith.constant 0 : i32
    %c0_i32_0 = arith.constant 0 : i32
    %c0_i32_1 = arith.constant 0 : i32
    return %c0_i32, %c0_i32_0 : i32, i32
  }
  func.func @transform_4(%arg0: i32) -> (i32, i32) {
    %c0_i32 = arith.constant 0 : i32
    %c0_i32_0 = arith.constant 0 : i32
    %c0_i32_1 = arith.constant 0 : i32
    return %c0_i32, %c0_i32_0 : i32, i32
  }
  func.func @transform_5(%arg0: i32) -> (i32, i32) {
    %c0_i32 = arith.constant 0 : i32
    %c0_i32_0 = arith.constant 0 : i32
    %c0_i32_1 = arith.constant 0 : i32
    return %c0_i32, %c0_i32_0 : i32, i32
  }
  func.func @transform_6(%arg0: i32) -> (i32, i32) {
    %c0_i32 = arith.constant 0 : i32
    %c0_i32_0 = arith.constant 0 : i32
    %c0_i32_1 = arith.constant 0 : i32
    return %c0_i32, %c0_i32_0 : i32, i32
  }
  func.func @transform_7(%arg0: i32) -> (i32, i32) {
    %c0_i32 = arith.constant 0 : i32
    %c0_i32_0 = arith.constant 0 : i32
    %c0_i32_1 = arith.constant 0 : i32
    return %c0_i32, %c0_i32_0 : i32, i32
  }
  func.func @transform_8(%arg0: i32) -> (i32, i32) {
    %c0_i32 = arith.constant 0 : i32
    %c0_i32_0 = arith.constant 0 : i32
    %c0_i32_1 = arith.constant 0 : i32
    return %c0_i32, %c0_i32_0 : i32, i32
  }
  func.func @transform_9(%arg0: i32) -> (i32, i32) {
    %c0_i32 = arith.constant 0 : i32
    %c0_i32_0 = arith.constant 0 : i32
    return %arg0, %c0_i32 : i32, i32
  }
}

</mosaic_0001>

<bundles_post_ra>
// kernel: multilayer_gru_forward.3
= control target key start
LH: loop header
LB: loop body
LE: loop exit
PB: predicated region body
PF: predicated region fallthrough
CT: control target
= control target key end

     0   :  { %v144_v0 = vmov 0.0   ;;  %vm145_vm0 = vmmov 0   ;;  %vm41_vm1 = vcmask 261120   ;;  %vm86_vm2 = vcmask 64512   ;;  %s193_s1 = inlined_call_operand.vmem [shape: bf16[32,8], index: 1, kind: input, shape index: {}]   ;;  %s194_s0 = inlined_call_operand.vmem [shape: f32[16,32], index: 0, kind: input, shape index: {}]   ;;  %s195_s2 = inlined_call_operand.vmem [shape: f32[1,8], index: 2, kind: input, shape index: {}]   ;;  %s196_s3 = inlined_call_operand.vmem [shape: f32[16,8], index: 3, kind: output, shape index: {}]  }
   0x1   :  { %124 = vmatprep.subr.bf16.mxu0 %v144_v0  ;;  %v134_v1 = vld [vmem:[%s193_s1] sm:$0xff]   ;;  %128 = vmatprep.mubr.msk.bf16.mxu0 %vm145_vm0, %v144_v0  ;;  %v135_v2 = vld [vmem:[%s193_s1 + $0x8] sm:$0xff]  }
   0x2   :  { %125 = vmatpush3.bf16.msra.mxu0 %v134_v1  ;;  %v15_v3 = vld [vmem:[%s194_s0] sm:$0xff]  ;;  %v16_v4 = vld [vmem:[%s194_s0 + $0x8] sm:$0xff] }
   0x3   :  { %126 = vmatprep.subr.bf16.mxu0 %v144_v0  ;;  %v17_v5 = vpack.c.bf16 %v16_v4, %v15_v3  ;;  %v117_v6 = vld [vmem:[%s195_s2] ss:$0 sm:$0xff] }
   0x6   :  { %127 = vmatpush3.bf16.msra.mxu0 %v135_v2 }
   0x9   :  { %129 = vmatmul.mubr.msk.bf16.vlgmr.msra.gmra.mrb[0].mxu0 %vm41_vm1, %v17_v5 }
  0xdc   :  { %v79_v7 = vpop.f32.mrb[0].mxu0 }
  0xdd   :  { %v80_v8 = vadd.f32 %v117_v6, %v79_v7  ;;  %v130_v9 = vpop.f32.mrb[1].mxu0 }
  0xde   :  { %v82_v10 = vpop.f32.mrb[2].mxu0 }
  0xdf   :  { %v83_v11 = vadd.f32 %v117_v6, %v82_v10  ;;  %v131_v12 = vpop.f32.mrb[3].mxu0  ;;  %v87_v13 = vsel %vm86_vm2, %v80_v8, -inf }
  0xe0   :  { %88 = vmax.xlane.f32.xlu0 %v87_v13 }
  0xe1   :  { %v90_v14 = vsel %vm86_vm2, %v83_v11, -inf }
  0xe4   :  { %91 = vmax.xlane.f32.xlu0 %v90_v14 }
 0x16d   :  { %v89_v15 = vpop.xlane.xlu0 %88 }
 0x16e   :  { %v93_v16 = vsub.f32 %v80_v8, %v89_v15 }
 0x170   :  { %v95_v17 = vmul.f32 1.442695, %v93_v16 }
 0x171   :  { %v92_v18 = vpop.xlane.xlu0 %91 }
 0x172   :  { %136 = vpow2.f32 %v95_v17  ;;  %v94_v19 = vsub.f32 %v83_v11, %v92_v18 }
 0x174   :  { %v97_v20 = vmul.f32 1.442695, %v94_v19 }
 0x176   :  { %138 = vpow2.f32 %v97_v20 }
 0x17c   :  { %v137_v21 = vpop.eup %136 }
 0x17d   :  { %v99_v22 = vsel %vm86_vm2, %v137_v21, 0.0 }
 0x17e   :  { %100 = vadd.xlane.f32.xlu1 %v99_v22 }
 0x180   :  { %v139_v23 = vpop.eup %138 }
 0x181   :  { %v102_v24 = vsel %vm86_vm2, %v139_v23, 0.0 }
 0x182   :  { %103 = vadd.xlane.f32.xlu1 %v102_v24 }
 0x20b   :  { %v101_v25 = vpop.xlane.xlu1 %100 }
 0x20c   :  { %140 = vlog2.f32 %v101_v25 }
 0x20f   :  { %v104_v26 = vpop.xlane.xlu1 %103 }
 0x210   :  { %142 = vlog2.f32 %v104_v26 }
 0x216   :  { %v141_v27 = vpop.eup %140 }
 0x217   :  { %v106_v28 = vmul.f32 0.6931472, %v141_v27 }
 0x219   :  { %v109_v29 = vsub.f32 %v93_v16, %v106_v28 }
 0x21a   :  { %v143_v30 = vpop.eup %142 }
 0x21b   :  { %111 = vst.msk [vmem:[%s196_s3] sm:$0xff] %vm86_vm2, %v109_v29  ;;  %v108_v31 = vmul.f32 0.6931472, %v143_v30 }
 0x21d   :  { %v110_v32 = vsub.f32 %v94_v19, %v108_v31 }
 0x21f   :  { %112 = vst.msk [vmem:[%s196_s3 + $0x8] sm:$0xff] %vm86_vm2, %v110_v32 }

// kernel: multilayer_gru_forward.2
= control target key start
LH: loop header
LB: loop body
LE: loop exit
PB: predicated region body
PF: predicated region fallthrough
CT: control target
= control target key end

     0   :  { %vm37_vm0 = vcmask 254976   ;;  %v2703_v0 = vmov 0.0   ;;  %vm2704_vm1 = vmmov 0   ;;  %vm58_vm2 = vcmask 130048   ;;  %s3177_s1 = inlined_call_operand.vmem [shape: bf16[16,96], index: 1, kind: input, shape index: {}]   ;;  %s3178_s0 = inlined_call_operand.vmem [shape: f32[16,16], index: 0, kind: input, shape index: {}]   ;;  %s3179_s2 = inlined_call_operand.vmem [shape: bf16[32,64], index: 2, kind: input, shape index: {}]   ;;  %s3180_s3 = inlined_call_operand.vmem [shape: bf16[32,32], index: 3, kind: input, shape index: {}]   ;;  %s3181_s4 = inlined_call_operand.vmem [shape: f32[1,96], index: 4, kind: input, shape index: {}]   ;;  %s3182_s5 = inlined_call_operand.vmem [shape: bf16[32,96], index: 5, kind: input, shape index: {}]   ;;  %s3183_s6 = inlined_call_operand.vmem [shape: bf16[32,64], index: 6, kind: input, shape index: {}]   ;;  %s3184_s7 = inlined_call_operand.vmem [shape: bf16[32,32], index: 7, kind: input, shape index: {}]   ;;  %s3185_s8 = inlined_call_operand.vmem [shape: f32[1,96], index: 8, kind: input, shape index: {}]   ;;  %s3186_s9 = inlined_call_operand.vmem [shape: f32[16,32], index: 9, kind: output, shape index: {}]  }
   0x1   :  { %2321 = vmatprep.subr.bf16.mxu0 %v2703_v0  ;;  %v2596_v1 = vld [vmem:[%s3177_s1] sm:$0xff]   ;;  %2323 = vmatprep.mubr.msk.bf16.mxu0 %vm2704_vm1, %v2703_v0  ;;  %38 = vst.msk [vmem:[#allocation2] sm:$0x3] %vm37_vm0, %v2703_v0  ;;  %39 = vst.msk [vmem:[#allocation2 + $0x2] sm:$0x3] %vm37_vm0, %v2703_v0  ;;  %v41_v3 = vld [vmem:[%s3178_s0 + $0x8] sm:$0xff] }
   0x2   :  { %2327 = vmatprep.subr.bf16.mxu1 %v2703_v0  ;;  %v40_v2 = vld [vmem:[%s3178_s0] sm:$0xff]  ;;  %2331 = vmatprep.mubr.msk.bf16.mxu1 %vm2704_vm1, %v2703_v0  ;;  %v2787_v6 = vld [vmem:[%s3179_s2 + $0x8] sm:$0xff]   ;;  %vm129_vm3 = vcmask 261120   ;;  %s2705_s0 = smov 32   ;;  %vm103_vm4 = vcmask 785408  }
   0x3   :  { %2322 = vmatpush3.bf16.msra.mxu0 %v2596_v1  ;;  %v42_v4 = vpack.c.bf16 %v41_v3, %v40_v2  ;;  %v2780_v5 = vld [vmem:[%s3179_s2] sm:$0xff]   ;;  %v2816_v10 = vld [vmem:[%s3180_s3 + $0x8] sm:$0xff]  }
   0x4   :  { %2335 = vmatprep.subr.bf16.mxu0 %v2703_v0  ;;  %2328 = vmatpush3.bf16.msra.mxu1 %v2780_v5  ;;  %v2810_v9 = vld [vmem:[%s3180_s3] sm:$0xff]   ;;  %s2706_s3 = smov 96  }
   0x5   :  { %2329 = vmatprep.subr.bf16.mxu1 %v2703_v0  ;;  %v2157_v11 = vld [vmem:[%s3181_s4] ss:$0 sm:$0xff]  ;;  %s2707_s4 = smov 64  }
   0x6   :  { %2324 = vmatmul.mubr.msk.bf16.vlgmr.msra.gmra.mrb[0].mxu0 %vm58_vm2, %v42_v4 }
   0x7   :  { %2339 = vmatprep.mubr.msk.bf16.mxu0 %vm2704_vm1, %v2703_v0  ;;  %2336 = vmatpush3.bf16.msra.mxu0 %v2810_v9 }
   0x8   :  { %v2792_v7 = vld [vmem:[#allocation2] sm:$0x3]  ;;  %2330 = vmatpush3.bf16.msra.mxu1 %v2787_v6  ;;  %2337 = vmatprep.subr.bf16.mxu0 %v2703_v0 }
   0x9   :  { %v116_v8 = vpack.c.bf16 %v2792_v7, %v2792_v7  ;;  %181 = vrot.lane.b32.xlu0 %v2792_v7, %s2705_s0  ;;  %2343 = vmatprep.subr.bf16.mxu1 %v2703_v0 }
   0xb   :  { %2332 = vmatmul.mubr.msk.bf16.vlgmr.msra.gmra.mrb[0].mxu1 %vm129_vm3, %v116_v8  ;;  %2338 = vmatpush3.bf16.msra.mxu0 %v2816_v10 }
   0xc   :  { %2344 = vmatpush3.bf16.msra.mxu1 %v2780_v5  ;;  %2347 = vmatprep.mubr.msk.bf16.mxu1 %vm2704_vm1, %v2703_v0 }
   0xd   :  { %2345 = vmatprep.subr.bf16.mxu1 %v2703_v0  ;;  %2351 = vmatprep.subr.bf16.mxu0 %v2703_v0 }
  0x10   :  { %2346 = vmatpush3.bf16.msra.mxu1 %v2787_v6 }
  0x11   :  { %2359 = vmatprep.subr.bf16.mxu1 %v2703_v0 }
  0x7b   :  { %v182_v27 = vpop.permute.xlu0 %181 }
  0xd9   :  { %v96_v12 = vpop.f32.mrb[0].mxu0 }
  0xda   :  { %v97_v13 = vadd.f32 %v2157_v11, %v96_v12  ;;  %v2325_v14 = vpop.f32.mrb[1].mxu0 }
  0xdb   :  { %v99_v15 = vpop.f32.mrb[2].mxu0 }
  0xdc   :  { %104 = vst.msk [vmem:[#allocation4] sm:$0xff] %vm103_vm4, %v97_v13  ;;  %v100_v16 = vadd.f32 %v2157_v11, %v99_v15  ;;  %v2326_v17 = vpop.f32.mrb[3].mxu0 }
  0xde   :  { %105 = vst.msk [vmem:[#allocation4 + $0x8] sm:$0xff] %vm103_vm4, %v100_v16  ;;  %v167_v18 = vpop.f32.mrb[0].mxu1 }
  0xdf   :  { %v2333_v19 = vpop.f32.mrb[1].mxu1 }
  0xe0   :  { %v170_v20 = vpop.f32.mrb[2].mxu1 }
  0xe1   :  { %v2334_v21 = vpop.f32.mrb[3].mxu1 }
  0xe3   :  { %v115_v22 = vld [vmem:[#allocation4] sm:$0x3]  ;;  %v260_v45 = vld [vmem:[#allocation4 + $0x2] sm:$0x3]  ;;  %v379_v13 = vld [vmem:[#allocation4 + $0x4] sm:$0x3] }
  0xe4   :  { %v173_v23 = vadd.f32 %v167_v18, %v115_v22 }
  0xe6   :  { %v2163_v24 = vmul.f32 -1.442695, %v173_v23 }
  0xe8   :  { %2607 = vpow2.f32 %v2163_v24 }
  0xf2   :  { %v2608_v25 = vpop.eup %2607 }
  0xf3   :  { %v177_v26 = vadd.f32 1.0, %v2608_v25 }
  0xf5   :  { %2609 = vrcp.f32 %v177_v26 }
  0xff   :  { %v2610_v28 = vpop.eup %2609 }
 0x100   :  { %v184_v29 = vmul.f32 %v2610_v28, %v182_v27  ;;  %v250_v39 = vsub.f32 1.0, %v2610_v28 }
 0x102   :  { %v185_v30 = vpack.c.bf16 %v184_v29, %v184_v29  ;;  %v251_v41 = vmul.f32 %v250_v39, %v2792_v7 }
 0x104   :  { %187 = vrot.lane.b32.xlu0 %v185_v30, %s2706_s3 }
 0x176   :  { %v188_v31 = vpop.permute.xlu0 %187 }
 0x177   :  { %2340 = vmatmul.mubr.msk.bf16.vlgmr.msra.gmra.mrb[4].mxu0 %vm129_vm3, %v188_v31 }
 0x178   :  { %2352 = vmatpush3.bf16.msra.mxu0 %v2810_v9  ;;  %2355 = vmatprep.mubr.msk.bf16.mxu0 %vm2704_vm1, %v2703_v0 }
 0x179   :  { %2353 = vmatprep.subr.bf16.mxu0 %v2703_v0 }
 0x17c   :  { %2354 = vmatpush3.bf16.msra.mxu0 %v2816_v10 }
 0x17d   :  { %2367 = vmatprep.subr.bf16.mxu0 %v2703_v0 }
 0x24a   :  { %v238_v32 = vpop.f32.mrb[4].mxu0 }
 0x24b   :  { %245 = vrot.lane.b32.xlu1 %v238_v32, %s2707_s4  ;;  %v2341_v33 = vpop.f32.mrb[5].mxu0 }
 0x24c   :  { %v241_v34 = vpop.f32.mrb[6].mxu0 }
 0x24d   :  { %v2342_v35 = vpop.f32.mrb[7].mxu0 }
 0x2bd   :  { %v246_v36 = vpop.permute.xlu1 %245 }
 0x2be   :  { %v248_v37 = vadd.f32 %v246_v36, %v115_v22 }
 0x2c0   :  { %2611 = vtanh.f32 %v248_v37 }
 0x2ca   :  { %v2612_v38 = vpop.eup %2611 }
 0x2cb   :  { %253 = vrot.lane.b32.xlu1 %v2612_v38, %s2707_s4 }
 0x33d   :  { %v254_v40 = vpop.permute.xlu1 %253 }
 0x33e   :  { %v256_v42 = vmul.f32 %v2610_v28, %v254_v40  ;;  %v498_v40 = vld [vmem:[#allocation4 + $0x6] sm:$0x3] }
 0x340   :  { %v257_v43 = vadd.f32 %v256_v42, %v251_v41 }
 0x342   :  { %259 = vst.msk [vmem:[#allocation3] sm:$0x3] %vm37_vm0, %v257_v43  ;;  %v261_v44 = vpack.c.bf16 %v257_v43, %v257_v43  ;;  %313 = vrot.lane.b32.xlu0 %v257_v43, %s2705_s0 }
 0x344   :  { %2348 = vmatmul.mubr.msk.bf16.vlgmr.msra.gmra.mrb[4].mxu1 %vm129_vm3, %v261_v44 }
 0x345   :  { %2360 = vmatpush3.bf16.msra.mxu1 %v2780_v5  ;;  %2363 = vmatprep.mubr.msk.bf16.mxu1 %vm2704_vm1, %v2703_v0 }
 0x346   :  { %2361 = vmatprep.subr.bf16.mxu1 %v2703_v0 }
 0x349   :  { %2362 = vmatpush3.bf16.msra.mxu1 %v2787_v6 }
 0x34a   :  { %2375 = vmatprep.subr.bf16.mxu1 %v2703_v0 }
 0x3b4   :  { %v314_v55 = vpop.permute.xlu0 %313 }
 0x417   :  { %v299_v46 = vpop.f32.mrb[4].mxu1 }
 0x418   :  { %v305_v47 = vadd.f32 %v299_v46, %v260_v45  ;;  %v2349_v48 = vpop.f32.mrb[5].mxu1 }
 0x419   :  { %v302_v49 = vpop.f32.mrb[6].mxu1 }
 0x41a   :  { %v2168_v50 = vmul.f32 -1.442695, %v305_v47  ;;  %v2350_v51 = vpop.f32.mrb[7].mxu1 }
 0x41c   :  { %2613 = vpow2.f32 %v2168_v50 }
 0x426   :  { %v2614_v52 = vpop.eup %2613 }
 0x427   :  { %v309_v53 = vadd.f32 1.0, %v2614_v52 }
 0x429   :  { %2615 = vrcp.f32 %v309_v53 }
 0x433   :  { %v2616_v54 = vpop.eup %2615 }
 0x434   :  { %v316_v56 = vmul.f32 %v2616_v54, %v314_v55  ;;  %v370_v3 = vsub.f32 1.0, %v2616_v54 }
 0x436   :  { %v317_v57 = vpack.c.bf16 %v316_v56, %v316_v56  ;;  %v371_v7 = vmul.f32 %v370_v3, %v257_v43 }
 0x438   :  { %319 = vrot.lane.b32.xlu1 %v317_v57, %s2706_s3 }
 0x4aa   :  { %v320_v58 = vpop.permute.xlu1 %319 }
 0x4ab   :  { %2356 = vmatmul.mubr.msk.bf16.vlgmr.msra.gmra.mrb[8].mxu0 %vm129_vm3, %v320_v58 }
 0x4ac   :  { %2368 = vmatpush3.bf16.msra.mxu0 %v2810_v9  ;;  %2371 = vmatprep.mubr.msk.bf16.mxu0 %vm2704_vm1, %v2703_v0 }
 0x4ad   :  { %2369 = vmatprep.subr.bf16.mxu0 %v2703_v0 }
 0x4b0   :  { %2370 = vmatpush3.bf16.msra.mxu0 %v2816_v10 }
 0x4b1   :  { %2383 = vmatprep.subr.bf16.mxu0 %v2703_v0 }
 0x57e   :  { %v358_v59 = vpop.f32.mrb[8].mxu0 }
 0x57f   :  { %365 = vrot.lane.b32.xlu0 %v358_v59, %s2707_s4  ;;  %v2357_v60 = vpop.f32.mrb[9].mxu0 }
 0x580   :  { %v361_v61 = vpop.f32.mrb[10].mxu0 }
 0x581   :  { %v2358_v62 = vpop.f32.mrb[11].mxu0 }
 0x5f1   :  { %v366_v63 = vpop.permute.xlu0 %365 }
 0x5f2   :  { %v368_v1 = vadd.f32 %v366_v63, %v260_v45 }
 0x5f4   :  { %2617 = vtanh.f32 %v368_v1 }
 0x5fe   :  { %v2618_v2 = vpop.eup %2617 }
 0x5ff   :  { %373 = vrot.lane.b32.xlu1 %v2618_v2, %s2707_s4 }
 0x671   :  { %v374_v4 = vpop.permute.xlu1 %373 }
 0x672   :  { %v376_v8 = vmul.f32 %v2616_v54, %v374_v4  ;;  %v617_v4 = vld [vmem:[#allocation4 + $0x8] sm:$0x3] }
 0x674   :  { %v377_v11 = vadd.f32 %v376_v8, %v371_v7 }
 0x676   :  { %378 = vst.msk [vmem:[#allocation3 + $0x2] sm:$0x3] %vm37_vm0, %v377_v11  ;;  %v380_v12 = vpack.c.bf16 %v377_v11, %v377_v11  ;;  %432 = vrot.lane.b32.xlu0 %v377_v11, %s2705_s0 }
 0x678   :  { %2364 = vmatmul.mubr.msk.bf16.vlgmr.msra.gmra.mrb[8].mxu1 %vm129_vm3, %v380_v12 }
 0x679   :  { %2376 = vmatpush3.bf16.msra.mxu1 %v2780_v5  ;;  %2379 = vmatprep.mubr.msk.bf16.mxu1 %vm2704_vm1, %v2703_v0 }
 0x67a   :  { %2377 = vmatprep.subr.bf16.mxu1 %v2703_v0 }
 0x67d   :  { %2378 = vmatpush3.bf16.msra.mxu1 %v2787_v6 }
 0x67e   :  { %2391 = vmatprep.subr.bf16.mxu1 %v2703_v0 }
 0x6e8   :  { %v433_v23 = vpop.permute.xlu0 %432 }
 0x74b   :  { %v418_v14 = vpop.f32.mrb[8].mxu1 }
 0x74c   :  { %v424_v15 = vadd.f32 %v418_v14, %v379_v13  ;;  %v2365_v16 = vpop.f32.mrb[9].mxu1 }
 0x74d   :  { %v421_v17 = vpop.f32.mrb[10].mxu1 }
 0x74e   :  { %v2171_v18 = vmul.f32 -1.442695, %v424_v15  ;;  %v2366_v19 = vpop.f32.mrb[11].mxu1 }
 0x750   :  { %2619 = vpow2.f32 %v2171_v18 }
 0x75a   :  { %v2620_v20 = vpop.eup %2619 }
 0x75b   :  { %v428_v21 = vadd.f32 1.0, %v2620_v20 }
 0x75d   :  { %2621 = vrcp.f32 %v428_v21 }
 0x767   :  { %v2622_v22 = vpop.eup %2621 }
 0x768   :  { %v435_v24 = vmul.f32 %v2622_v22, %v433_v23  ;;  %v489_v34 = vsub.f32 1.0, %v2622_v22 }
 0x76a   :  { %v436_v25 = vpack.c.bf16 %v435_v24, %v435_v24  ;;  %v490_v36 = vmul.f32 %v489_v34, %v377_v11 }
 0x76c   :  { %438 = vrot.lane.b32.xlu1 %v436_v25, %s2706_s3 }
 0x7de   :  { %v439_v26 = vpop.permute.xlu1 %438 }
 0x7df   :  { %2372 = vmatmul.mubr.msk.bf16.vlgmr.msra.gmra.mrb[12].mxu0 %vm129_vm3, %v439_v26 }
 0x7e0   :  { %2384 = vmatpush3.bf16.msra.mxu0 %v2810_v9  ;;  %2387 = vmatprep.mubr.msk.bf16.mxu0 %vm2704_vm1, %v2703_v0 }
 0x7e1   :  { %2385 = vmatprep.subr.bf16.mxu0 %v2703_v0 }
 0x7e4   :  { %2386 = vmatpush3.bf16.msra.mxu0 %v2816_v10 }
 0x7e5   :  { %2399 = vmatprep.subr.bf16.mxu0 %v2703_v0 }
 0x8b2   :  { %v477_v27 = vpop.f32.mrb[12].mxu0 }
 0x8b3   :  { %484 = vrot.lane.b32.xlu0 %v477_v27, %s2707_s4  ;;  %v2373_v28 = vpop.f32.mrb[13].mxu0 }
 0x8b4   :  { %v480_v29 = vpop.f32.mrb[14].mxu0 }
 0x8b5   :  { %v2374_v30 = vpop.f32.mrb[15].mxu0 }
 0x925   :  { %v485_v31 = vpop.permute.xlu0 %484 }
 0x926   :  { %v487_v32 = vadd.f32 %v485_v31, %v379_v13 }
 0x928   :  { %2623 = vtanh.f32 %v487_v32 }
 0x932   :  { %v2624_v33 = vpop.eup %2623 }
 0x933   :  { %492 = vrot.lane.b32.xlu1 %v2624_v33, %s2707_s4 }
 0x9a5   :  { %v493_v35 = vpop.permute.xlu1 %492 }
 0x9a6   :  { %v495_v37 = vmul.f32 %v2622_v22, %v493_v35  ;;  %v736_v35 = vld [vmem:[#allocation4 + $0xa] sm:$0x3] }
 0x9a8   :  { %v496_v38 = vadd.f32 %v495_v37, %v490_v36 }
 0x9aa   :  { %497 = vst.msk [vmem:[#allocation3 + $0x4] sm:$0x3] %vm37_vm0, %v496_v38  ;;  %v499_v39 = vpack.c.bf16 %v496_v38, %v496_v38  ;;  %551 = vrot.lane.b32.xlu0 %v496_v38, %s2705_s0 }
 0x9ac   :  { %2380 = vmatmul.mubr.msk.bf16.vlgmr.msra.gmra.mrb[12].mxu1 %vm129_vm3, %v499_v39 }
 0x9ad   :  { %2392 = vmatpush3.bf16.msra.mxu1 %v2780_v5  ;;  %2395 = vmatprep.mubr.msk.bf16.mxu1 %vm2704_vm1, %v2703_v0 }
 0x9ae   :  { %2393 = vmatprep.subr.bf16.mxu1 %v2703_v0 }
 0x9b1   :  { %2394 = vmatpush3.bf16.msra.mxu1 %v2787_v6 }
 0x9b2   :  { %2407 = vmatprep.subr.bf16.mxu1 %v2703_v0 }
 0xa1c   :  { %v552_v50 = vpop.permute.xlu0 %551 }
 0xa7f   :  { %v537_v41 = vpop.f32.mrb[12].mxu1 }
 0xa80   :  { %v543_v42 = vadd.f32 %v537_v41, %v498_v40  ;;  %v2381_v43 = vpop.f32.mrb[13].mxu1 }
 0xa81   :  { %v540_v44 = vpop.f32.mrb[14].mxu1 }
 0xa82   :  { %v2174_v45 = vmul.f32 -1.442695, %v543_v42  ;;  %v2382_v46 = vpop.f32.mrb[15].mxu1 }
 0xa84   :  { %2625 = vpow2.f32 %v2174_v45 }
 0xa8e   :  { %v2626_v47 = vpop.eup %2625 }
 0xa8f   :  { %v547_v48 = vadd.f32 1.0, %v2626_v47 }
 0xa91   :  { %2627 = vrcp.f32 %v547_v48 }
 0xa9b   :  { %v2628_v49 = vpop.eup %2627 }
 0xa9c   :  { %v554_v51 = vmul.f32 %v2628_v49, %v552_v50  ;;  %v608_v61 = vsub.f32 1.0, %v2628_v49 }
 0xa9e   :  { %v555_v52 = vpack.c.bf16 %v554_v51, %v554_v51  ;;  %v609_v63 = vmul.f32 %v608_v61, %v496_v38 }
 0xaa0   :  { %557 = vrot.lane.b32.xlu1 %v555_v52, %s2706_s3 }
 0xb12   :  { %v558_v53 = vpop.permute.xlu1 %557 }
 0xb13   :  { %2388 = vmatmul.mubr.msk.bf16.vlgmr.msra.gmra.mrb[16].mxu0 %vm129_vm3, %v558_v53 }
 0xb14   :  { %2400 = vmatpush3.bf16.msra.mxu0 %v2810_v9  ;;  %2403 = vmatprep.mubr.msk.bf16.mxu0 %vm2704_vm1, %v2703_v0 }
 0xb15   :  { %2401 = vmatprep.subr.bf16.mxu0 %v2703_v0 }
 0xb18   :  { %2402 = vmatpush3.bf16.msra.mxu0 %v2816_v10 }
 0xb19   :  { %2415 = vmatprep.subr.bf16.mxu0 %v2703_v0 }
 0xbe6   :  { %v596_v54 = vpop.f32.mrb[16].mxu0 }
 0xbe7   :  { %603 = vrot.lane.b32.xlu0 %v596_v54, %s2707_s4  ;;  %v2389_v55 = vpop.f32.mrb[17].mxu0 }
 0xbe8   :  { %v599_v56 = vpop.f32.mrb[18].mxu0 }
 0xbe9   :  { %v2390_v57 = vpop.f32.mrb[19].mxu0 }
 0xc59   :  { %v604_v58 = vpop.permute.xlu0 %603 }
 0xc5a   :  { %v606_v59 = vadd.f32 %v604_v58, %v498_v40 }
 0xc5c   :  { %2629 = vtanh.f32 %v606_v59 }
 0xc66   :  { %v2630_v60 = vpop.eup %2629 }
 0xc67   :  { %611 = vrot.lane.b32.xlu1 %v2630_v60, %s2707_s4 }
 0xcd9   :  { %v612_v62 = vpop.permute.xlu1 %611 }
 0xcda   :  { %v614_v1 = vmul.f32 %v2628_v49, %v612_v62  ;;  %v855_v62 = vld [vmem:[#allocation4 + $0xc] sm:$0x3] }
 0xcdc   :  { %v615_v2 = vadd.f32 %v614_v1, %v609_v63 }
 0xcde   :  { %616 = vst.msk [vmem:[#allocation3 + $0x6] sm:$0x3] %vm37_vm0, %v615_v2  ;;  %v618_v3 = vpack.c.bf16 %v615_v2, %v615_v2  ;;  %670 = vrot.lane.b32.xlu0 %v615_v2, %s2705_s0 }
 0xce0   :  { %2396 = vmatmul.mubr.msk.bf16.vlgmr.msra.gmra.mrb[16].mxu1 %vm129_vm3, %v618_v3 }
 0xce1   :  { %2408 = vmatpush3.bf16.msra.mxu1 %v2780_v5  ;;  %2411 = vmatprep.mubr.msk.bf16.mxu1 %vm2704_vm1, %v2703_v0 }
 0xce2   :  { %2409 = vmatprep.subr.bf16.mxu1 %v2703_v0 }
 0xce5   :  { %2410 = vmatpush3.bf16.msra.mxu1 %v2787_v6 }
 0xce6   :  { %2423 = vmatprep.subr.bf16.mxu1 %v2703_v0 }
 0xd50   :  { %v671_v18 = vpop.permute.xlu0 %670 }
 0xdb3   :  { %v656_v7 = vpop.f32.mrb[16].mxu1 }
 0xdb4   :  { %v662_v8 = vadd.f32 %v656_v7, %v617_v4  ;;  %v2397_v11 = vpop.f32.mrb[17].mxu1 }
 0xdb5   :  { %v659_v12 = vpop.f32.mrb[18].mxu1 }
 0xdb6   :  { %v2177_v13 = vmul.f32 -1.442695, %v662_v8  ;;  %v2398_v14 = vpop.f32.mrb[19].mxu1 }
 0xdb8   :  { %2631 = vpow2.f32 %v2177_v13 }
 0xdc2   :  { %v2632_v15 = vpop.eup %2631 }
 0xdc3   :  { %v666_v16 = vadd.f32 1.0, %v2632_v15 }
 0xdc5   :  { %2633 = vrcp.f32 %v666_v16 }
 0xdcf   :  { %v2634_v17 = vpop.eup %2633 }
 0xdd0   :  { %v673_v19 = vmul.f32 %v2634_v17, %v671_v18  ;;  %v727_v29 = vsub.f32 1.0, %v2634_v17 }
 0xdd2   :  { %v674_v20 = vpack.c.bf16 %v673_v19, %v673_v19  ;;  %v728_v31 = vmul.f32 %v727_v29, %v615_v2 }
 0xdd4   :  { %676 = vrot.lane.b32.xlu1 %v674_v20, %s2706_s3 }
 0xe46   :  { %v677_v21 = vpop.permute.xlu1 %676 }
 0xe47   :  { %2404 = vmatmul.mubr.msk.bf16.vlgmr.msra.gmra.mrb[20].mxu0 %vm129_vm3, %v677_v21 }
 0xe48   :  { %2416 = vmatpush3.bf16.msra.mxu0 %v2810_v9  ;;  %2419 = vmatprep.mubr.msk.bf16.mxu0 %vm2704_vm1, %v2703_v0 }
 0xe49   :  { %2417 = vmatprep.subr.bf16.mxu0 %v2703_v0 }
 0xe4c   :  { %2418 = vmatpush3.bf16.msra.mxu0 %v2816_v10 }
 0xe4d   :  { %2431 = vmatprep.subr.bf16.mxu0 %v2703_v0 }
 0xf1a   :  { %v715_v22 = vpop.f32.mrb[20].mxu0 }
 0xf1b   :  { %722 = vrot.lane.b32.xlu0 %v715_v22, %s2707_s4  ;;  %v2405_v23 = vpop.f32.mrb[21].mxu0 }
 0xf1c   :  { %v718_v24 = vpop.f32.mrb[22].mxu0 }
 0xf1d   :  { %v2406_v25 = vpop.f32.mrb[23].mxu0 }
 0xf8d   :  { %v723_v26 = vpop.permute.xlu0 %722 }
 0xf8e   :  { %v725_v27 = vadd.f32 %v723_v26, %v617_v4  ;;  %v974_v26 = vld [vmem:[#allocation4 + $0xe] sm:$0x3] }
 0xf90   :  { %2635 = vtanh.f32 %v725_v27 }
 0xf9a   :  { %v2636_v28 = vpop.eup %2635 }
 0xf9b   :  { %730 = vrot.lane.b32.xlu1 %v2636_v28, %s2707_s4 }
0x100d   :  { %v731_v30 = vpop.permute.xlu1 %730 }
0x100e   :  { %v733_v32 = vmul.f32 %v2634_v17, %v731_v30 }
0x1010   :  { %v734_v33 = vadd.f32 %v733_v32, %v728_v31 }
0x1012   :  { %735 = vst.msk [vmem:[#allocation3 + $0x8] sm:$0x3] %vm37_vm0, %v734_v33  ;;  %v737_v34 = vpack.c.bf16 %v734_v33, %v734_v33  ;;  %789 = vrot.lane.b32.xlu0 %v734_v33, %s2705_s0 }
0x1014   :  { %2412 = vmatmul.mubr.msk.bf16.vlgmr.msra.gmra.mrb[20].mxu1 %vm129_vm3, %v737_v34 }
0x1015   :  { %2424 = vmatpush3.bf16.msra.mxu1 %v2780_v5  ;;  %2427 = vmatprep.mubr.msk.bf16.mxu1 %vm2704_vm1, %v2703_v0 }
0x1016   :  { %2425 = vmatprep.subr.bf16.mxu1 %v2703_v0 }
0x1019   :  { %2426 = vmatpush3.bf16.msra.mxu1 %v2787_v6 }
0x101a   :  { %2439 = vmatprep.subr.bf16.mxu1 %v2703_v0 }
0x1084   :  { %v790_v45 = vpop.permute.xlu0 %789 }
0x10e7   :  { %v775_v36 = vpop.f32.mrb[20].mxu1 }
0x10e8   :  { %v781_v37 = vadd.f32 %v775_v36, %v736_v35  ;;  %v2413_v38 = vpop.f32.mrb[21].mxu1 }
0x10e9   :  { %v778_v39 = vpop.f32.mrb[22].mxu1 }
0x10ea   :  { %v2180_v40 = vmul.f32 -1.442695, %v781_v37  ;;  %v2414_v41 = vpop.f32.mrb[23].mxu1 }
0x10ec   :  { %2637 = vpow2.f32 %v2180_v40 }
0x10f6   :  { %v2638_v42 = vpop.eup %2637 }
0x10f7   :  { %v785_v43 = vadd.f32 1.0, %v2638_v42 }
0x10f9   :  { %2639 = vrcp.f32 %v785_v43 }
0x1103   :  { %v2640_v44 = vpop.eup %2639 }
0x1104   :  { %v792_v46 = vmul.f32 %v2640_v44, %v790_v45  ;;  %v846_v56 = vsub.f32 1.0, %v2640_v44 }
0x1106   :  { %v793_v47 = vpack.c.bf16 %v792_v46, %v792_v46  ;;  %v847_v58 = vmul.f32 %v846_v56, %v734_v33  ;;  %v2601_v46 = vld [vmem:[%s3182_s5] sm:$0xff]  }
0x1108   :  { %795 = vrot.lane.b32.xlu1 %v793_v47, %s2706_s3  ;;  %v2602_v47 = vld [vmem:[%s3182_s5 + $0x8] sm:$0xff]  }
0x117a   :  { %v796_v48 = vpop.permute.xlu1 %795 }
0x117b   :  { %2420 = vmatmul.mubr.msk.bf16.vlgmr.msra.gmra.mrb[24].mxu0 %vm129_vm3, %v796_v48 }
0x117c   :  { %2432 = vmatpush3.bf16.msra.mxu0 %v2810_v9  ;;  %2435 = vmatprep.mubr.msk.bf16.mxu0 %vm2704_vm1, %v2703_v0 }
0x117d   :  { %2433 = vmatprep.subr.bf16.mxu0 %v2703_v0 }
0x1180   :  { %2434 = vmatpush3.bf16.msra.mxu0 %v2816_v10 }
0x1181   :  { %2447 = vmatprep.subr.bf16.mxu0 %v2703_v0 }
0x124e   :  { %v834_v49 = vpop.f32.mrb[24].mxu0 }
0x124f   :  { %841 = vrot.lane.b32.xlu0 %v834_v49, %s2707_s4  ;;  %v2421_v50 = vpop.f32.mrb[25].mxu0  ;;  %v2973_v49 = vld [vmem:[%s3183_s6] sm:$0xff]  }
0x1250   :  { %v837_v51 = vpop.f32.mrb[26].mxu0  ;;  %v2979_v50 = vld [vmem:[%s3183_s6 + $0x8] sm:$0xff]  }
0x1251   :  { %v2422_v52 = vpop.f32.mrb[27].mxu0  ;;  %v2981_v51 = vld [vmem:[#allocation2 + $0x2] sm:$0x3] }
0x1252   :  { %v1177_v52 = vpack.c.bf16 %v2981_v51, %v2981_v51 }
0x12c1   :  { %v842_v53 = vpop.permute.xlu0 %841 }
0x12c2   :  { %v844_v54 = vadd.f32 %v842_v53, %v736_v35 }
0x12c4   :  { %2641 = vtanh.f32 %v844_v54 }
0x12ce   :  { %v2642_v55 = vpop.eup %2641 }
0x12cf   :  { %849 = vrot.lane.b32.xlu1 %v2642_v55, %s2707_s4 }
0x1341   :  { %v850_v57 = vpop.permute.xlu1 %849 }
0x1342   :  { %v852_v59 = vmul.f32 %v2640_v44, %v850_v57 }
0x1344   :  { %v853_v60 = vadd.f32 %v852_v59, %v847_v58  ;;  %v1094_v58 = vld [vmem:[#allocation3] sm:$0xff] }
0x1346   :  { %854 = vst.msk [vmem:[#allocation3 + $0xa] sm:$0x3] %vm37_vm0, %v853_v60  ;;  %v856_v61 = vpack.c.bf16 %v853_v60, %v853_v60  ;;  %908 = vrot.lane.b32.xlu0 %v853_v60, %s2705_s0 }
0x1348   :  { %2428 = vmatmul.mubr.msk.bf16.vlgmr.msra.gmra.mrb[24].mxu1 %vm129_vm3, %v856_v61 }
0x1349   :  { %2440 = vmatpush3.bf16.msra.mxu1 %v2780_v5  ;;  %2443 = vmatprep.mubr.msk.bf16.mxu1 %vm2704_vm1, %v2703_v0 }
0x134a   :  { %2441 = vmatprep.subr.bf16.mxu1 %v2703_v0 }
0x134d   :  { %2442 = vmatpush3.bf16.msra.mxu1 %v2787_v6 }
0x134e   :  { %2455 = vmatprep.subr.bf16.mxu1 %v2703_v0 }
0x13b8   :  { %v909_v12 = vpop.permute.xlu0 %908 }
0x141b   :  { %v894_v63 = vpop.f32.mrb[24].mxu1 }
0x141c   :  { %v900_v1 = vadd.f32 %v894_v63, %v855_v62  ;;  %v2429_v2 = vpop.f32.mrb[25].mxu1 }
0x141d   :  { %v897_v3 = vpop.f32.mrb[26].mxu1  ;;  %v3005_v2 = vld [vmem:[%s3184_s7] sm:$0xff]  }
0x141e   :  { %v2183_v4 = vmul.f32 -1.442695, %v900_v1  ;;  %v2430_v7 = vpop.f32.mrb[27].mxu1  ;;  %v3011_v3 = vld [vmem:[%s3184_s7 + $0x8] sm:$0xff]  }
0x1420   :  { %2643 = vpow2.f32 %v2183_v4  ;;  %v2188_v4 = vld [vmem:[%s3185_s8] ss:$0 sm:$0xff] }
0x142a   :  { %v2644_v8 = vpop.eup %2643 }
0x142b   :  { %v904_v11 = vadd.f32 1.0, %v2644_v8 }
0x142d   :  { %2645 = vrcp.f32 %v904_v11 }
0x1437   :  { %v2646_v5 = vpop.eup %2645 }
0x1438   :  { %v911_v13 = vmul.f32 %v2646_v5, %v909_v12 }
0x143a   :  { %v912_v14 = vpack.c.bf16 %v911_v13, %v911_v13 }
0x143c   :  { %914 = vrot.lane.b32.xlu1 %v912_v14, %s2706_s3 }
0x14ae   :  { %v915_v6 = vpop.permute.xlu1 %914 }
0x14af   :  { %2436 = vmatmul.mubr.msk.bf16.vlgmr.msra.gmra.mrb[28].mxu0 %vm129_vm3, %v915_v6 }
0x14b0   :  { %2448 = vmatpush3.bf16.msra.mxu0 %v2810_v9  ;;  %2451 = vmatprep.mubr.msk.bf16.mxu0 %vm2704_vm1, %v2703_v0  ;;  %v965_v9 = vsub.f32 1.0, %v2646_v5 }
0x14b1   :  { %2449 = vmatprep.subr.bf16.mxu0 %v2703_v0 }
0x14b2   :  { %v966_v23 = vmul.f32 %v965_v9, %v853_v60 }
0x14b4   :  { %2450 = vmatpush3.bf16.msra.mxu0 %v2816_v10 }
0x14b5   :  { %2463 = vmatprep.subr.bf16.mxu0 %v2703_v0 }
0x1582   :  { %v953_v15 = vpop.f32.mrb[28].mxu0 }
0x1583   :  { %960 = vrot.lane.b32.xlu0 %v953_v15, %s2707_s4  ;;  %v2437_v16 = vpop.f32.mrb[29].mxu0 }
0x1584   :  { %v956_v17 = vpop.f32.mrb[30].mxu0 }
0x1585   :  { %v2438_v18 = vpop.f32.mrb[31].mxu0 }
0x15f5   :  { %v961_v19 = vpop.permute.xlu0 %960 }
0x15f6   :  { %v963_v20 = vadd.f32 %v961_v19, %v855_v62 }
0x15f8   :  { %2647 = vtanh.f32 %v963_v20 }
0x1602   :  { %v2648_v21 = vpop.eup %2647 }
0x1603   :  { %968 = vrot.lane.b32.xlu1 %v2648_v21, %s2707_s4 }
0x1675   :  { %v969_v22 = vpop.permute.xlu1 %968 }
0x1676   :  { %v971_v24 = vmul.f32 %v2646_v5, %v969_v22 }
0x1678   :  { %v972_v25 = vadd.f32 %v971_v24, %v966_v23 }
0x167a   :  { %973 = vst.msk [vmem:[#allocation3 + $0xc] sm:$0x3] %vm37_vm0, %v972_v25  ;;  %v975_v10 = vpack.c.bf16 %v972_v25, %v972_v25  ;;  %1027 = vrot.lane.b32.xlu0 %v972_v25, %s2705_s0 }
0x167c   :  { %2444 = vmatmul.mubr.msk.bf16.vlgmr.msra.gmra.mrb[28].mxu1 %vm129_vm3, %v975_v10 }
0x167d   :  { %2459 = vmatprep.mubr.msk.bf16.mxu1 %vm2704_vm1, %v2703_v0  ;;  %2456 = vmatpush3.bf16.msra.mxu1 %v2601_v46 }
0x167e   :  { %2457 = vmatprep.subr.bf16.mxu1 %v2703_v0 }
0x1681   :  { %2458 = vmatpush3.bf16.msra.mxu1 %v2602_v47 }
0x1682   :  { %2471 = vmatprep.subr.bf16.mxu1 %v2703_v0 }
0x16ec   :  { %v1028_v36 = vpop.permute.xlu0 %1027 }
0x174f   :  { %v1013_v27 = vpop.f32.mrb[28].mxu1 }
0x1750   :  { %v1019_v28 = vadd.f32 %v1013_v27, %v974_v26  ;;  %v2445_v29 = vpop.f32.mrb[29].mxu1 }
0x1751   :  { %v1016_v30 = vpop.f32.mrb[30].mxu1 }
0x1752   :  { %v2186_v31 = vmul.f32 -1.442695, %v1019_v28  ;;  %v2446_v32 = vpop.f32.mrb[31].mxu1 }
0x1754   :  { %2649 = vpow2.f32 %v2186_v31 }
0x175e   :  { %v2650_v33 = vpop.eup %2649 }
0x175f   :  { %v1023_v34 = vadd.f32 1.0, %v2650_v33 }
0x1761   :  { %2651 = vrcp.f32 %v1023_v34 }
0x176b   :  { %v2652_v35 = vpop.eup %2651 }
0x176c   :  { %v1030_v37 = vmul.f32 %v2652_v35, %v1028_v36  ;;  %v1084_v53 = vsub.f32 1.0, %v2652_v35 }
0x176e   :  { %v1031_v38 = vpack.c.bf16 %v1030_v37, %v1030_v37  ;;  %v1085_v55 = vmul.f32 %v1084_v53, %v972_v25 }
0x1770   :  { %1033 = vrot.lane.b32.xlu1 %v1031_v38, %s2706_s3 }
0x17e2   :  { %v1034_v39 = vpop.permute.xlu1 %1033 }
0x17e3   :  { %2452 = vmatmul.mubr.msk.bf16.vlgmr.msra.gmra.mrb[32].mxu0 %vm129_vm3, %v1034_v39 }
0x17e4   :  { %2467 = vmatprep.mubr.msk.bf16.mxu0 %vm2704_vm1, %v2703_v0  ;;  %2464 = vmatpush3.bf16.msra.mxu0 %v2973_v49 }
0x17e5   :  { %2465 = vmatprep.subr.bf16.mxu0 %v2703_v0 }
0x17e8   :  { %2466 = vmatpush3.bf16.msra.mxu0 %v2979_v50 }
0x17e9   :  { %2479 = vmatprep.subr.bf16.mxu0 %v2703_v0 }
0x17eb   :  { %2468 = vmatmul.mubr.msk.bf16.vlgmr.msra.gmra.mrb[36].mxu0 %vm129_vm3, %v1177_v52 }
0x17ec   :  { %2480 = vmatpush3.bf16.msra.mxu0 %v2973_v49  ;;  %2483 = vmatprep.mubr.msk.bf16.mxu0 %vm2704_vm1, %v2703_v0 }
0x17ed   :  { %2481 = vmatprep.subr.bf16.mxu0 %v2703_v0 }
0x17f0   :  { %2482 = vmatpush3.bf16.msra.mxu0 %v2979_v50 }
0x17f1   :  { %2495 = vmatprep.subr.bf16.mxu0 %v2703_v0 }
0x18b6   :  { %v1072_v40 = vpop.f32.mrb[32].mxu0 }
0x18b7   :  { %1079 = vrot.lane.b32.xlu0 %v1072_v40, %s2707_s4  ;;  %v2453_v41 = vpop.f32.mrb[33].mxu0 }
0x18b8   :  { %v1075_v42 = vpop.f32.mrb[34].mxu0 }
0x18b9   :  { %v2454_v43 = vpop.f32.mrb[35].mxu0 }
0x18bb   :  { %1241 = vrot.lane.b32.xlu0 %v2981_v51, %s2705_s0 }
0x18be   :  { %v1227_v61 = vpop.f32.mrb[36].mxu0 }
0x18bf   :  { %v2469_v62 = vpop.f32.mrb[37].mxu0 }
0x18c0   :  { %v1230_v63 = vpop.f32.mrb[38].mxu0 }
0x18c1   :  { %v2470_v1 = vpop.f32.mrb[39].mxu0 }
0x1929   :  { %v1080_v44 = vpop.permute.xlu0 %1079 }
0x192a   :  { %v1082_v45 = vadd.f32 %v1080_v44, %v974_v26 }
0x192c   :  { %2653 = vtanh.f32 %v1082_v45 }
0x192d   :  { %v1242_v18 = vpop.permute.xlu0 %1241 }
0x1936   :  { %v2654_v48 = vpop.eup %2653 }
0x1937   :  { %1087 = vrot.lane.b32.xlu1 %v2654_v48, %s2707_s4 }
0x19a9   :  { %v1088_v54 = vpop.permute.xlu1 %1087 }
0x19aa   :  { %v1090_v56 = vmul.f32 %v2652_v35, %v1088_v54 }
0x19ac   :  { %v1091_v57 = vadd.f32 %v1090_v56, %v1085_v55 }
0x19ae   :  { %1092 = vst.msk [vmem:[#allocation3 + $0xe] sm:$0x3] %vm37_vm0, %v1091_v57  ;;  %1093 = vst.msk [vmem:[#allocation2] sm:$0x3] %vm37_vm0, %v1091_v57 }
0x19b5   :  { %v1095_v59 = vld [vmem:[#allocation3 + $0x8] sm:$0xff] }
0x19b6   :  { %v1096_v60 = vpack.c.bf16 %v1095_v59, %v1094_v58 }
0x19b8   :  { %2460 = vmatmul.mubr.msk.bf16.vlgmr.msra.gmra.mrb[32].mxu1 %vm129_vm3, %v1096_v60 }
0x19b9   :  { %2475 = vmatprep.mubr.msk.bf16.mxu1 %vm2704_vm1, %v2703_v0  ;;  %2472 = vmatpush3.bf16.msra.mxu1 %v3005_v2 }
0x19ba   :  { %2473 = vmatprep.subr.bf16.mxu1 %v2703_v0 }
0x19bd   :  { %2474 = vmatpush3.bf16.msra.mxu1 %v3011_v3 }
0x19be   :  { %2487 = vmatprep.subr.bf16.mxu1 %v2703_v0 }
0x1a8b   :  { %v1157_v7 = vpop.f32.mrb[32].mxu1 }
0x1a8c   :  { %v1158_v8 = vadd.f32 %v2188_v4, %v1157_v7  ;;  %v2461_v11 = vpop.f32.mrb[33].mxu1 }
0x1a8d   :  { %v1160_v5 = vpop.f32.mrb[34].mxu1 }
0x1a8e   :  { %1164 = vst.msk [vmem:[#allocation4] sm:$0xff] %vm103_vm4, %v1158_v8  ;;  %v1161_v12 = vadd.f32 %v2188_v4, %v1160_v5  ;;  %v2462_v13 = vpop.f32.mrb[35].mxu1 }
0x1a90   :  { %1165 = vst.msk [vmem:[#allocation4 + $0x8] sm:$0xff] %vm103_vm4, %v1161_v12 }
0x1a95   :  { %v1176_v14 = vld [vmem:[#allocation4] sm:$0x3]  ;;  %v1319_v34 = vld [vmem:[#allocation4 + $0x2] sm:$0x3]  ;;  %v1438_v63 = vld [vmem:[#allocation4 + $0x4] sm:$0x3] }
0x1a96   :  { %v1233_v6 = vadd.f32 %v1227_v61, %v1176_v14 }
0x1a98   :  { %v2195_v15 = vmul.f32 -1.442695, %v1233_v6 }
0x1a9a   :  { %2655 = vpow2.f32 %v2195_v15 }
0x1aa4   :  { %v2656_v16 = vpop.eup %2655 }
0x1aa5   :  { %v1237_v17 = vadd.f32 1.0, %v2656_v16 }
0x1aa7   :  { %2657 = vrcp.f32 %v1237_v17 }
0x1ab1   :  { %v2658_v19 = vpop.eup %2657 }
0x1ab2   :  { %v1244_v20 = vmul.f32 %v2658_v19, %v1242_v18  ;;  %v1310_v28 = vsub.f32 1.0, %v2658_v19 }
0x1ab4   :  { %v1245_v21 = vpack.c.bf16 %v1244_v20, %v1244_v20  ;;  %v1311_v30 = vmul.f32 %v1310_v28, %v2981_v51 }
0x1ab6   :  { %1247 = vrot.lane.b32.xlu1 %v1245_v21, %s2706_s3 }
0x1b28   :  { %v1248_v9 = vpop.permute.xlu1 %1247 }
0x1b29   :  { %2476 = vmatmul.mubr.msk.bf16.vlgmr.msra.gmra.mrb[36].mxu1 %vm129_vm3, %v1248_v9 }
0x1b2a   :  { %2488 = vmatpush3.bf16.msra.mxu1 %v3005_v2  ;;  %2491 = vmatprep.mubr.msk.bf16.mxu1 %vm2704_vm1, %v2703_v0 }
0x1b2b   :  { %2489 = vmatprep.subr.bf16.mxu1 %v2703_v0 }
0x1b2e   :  { %2490 = vmatpush3.bf16.msra.mxu1 %v3011_v3 }
0x1b2f   :  { %2503 = vmatprep.subr.bf16.mxu1 %v2703_v0 }
0x1bfc   :  { %v1298_v22 = vpop.f32.mrb[36].mxu1 }
0x1bfd   :  { %1305 = vrot.lane.b32.xlu0 %v1298_v22, %s2707_s4  ;;  %v2477_v23 = vpop.f32.mrb[37].mxu1 }
0x1bfe   :  { %v1301_v24 = vpop.f32.mrb[38].mxu1 }
0x1bff   :  { %v2478_v25 = vpop.f32.mrb[39].mxu1 }
0x1c6f   :  { %v1306_v10 = vpop.permute.xlu0 %1305 }
0x1c70   :  { %v1308_v26 = vadd.f32 %v1306_v10, %v1176_v14 }
0x1c72   :  { %2659 = vtanh.f32 %v1308_v26 }
0x1c7c   :  { %v2660_v27 = vpop.eup %2659 }
0x1c7d   :  { %1313 = vrot.lane.b32.xlu1 %v2660_v27, %s2707_s4 }
0x1cef   :  { %v1314_v29 = vpop.permute.xlu1 %1313 }
0x1cf0   :  { %v1316_v31 = vmul.f32 %v2658_v19, %v1314_v29  ;;  %v1557_v29 = vld [vmem:[#allocation4 + $0x6] sm:$0x3] }
0x1cf2   :  { %v1317_v32 = vadd.f32 %v1316_v31, %v1311_v30 }
0x1cf4   :  { %1318 = vst.msk [vmem:[%s3186_s9] sm:$0x3] %vm37_vm0, %v1317_v32  ;;  %v1320_v33 = vpack.c.bf16 %v1317_v32, %v1317_v32  ;;  %1372 = vrot.lane.b32.xlu0 %v1317_v32, %s2705_s0 }
0x1cf6   :  { %2484 = vmatmul.mubr.msk.bf16.vlgmr.msra.gmra.mrb[40].mxu0 %vm129_vm3, %v1320_v33 }
0x1cf7   :  { %2496 = vmatpush3.bf16.msra.mxu0 %v2973_v49  ;;  %2499 = vmatprep.mubr.msk.bf16.mxu0 %vm2704_vm1, %v2703_v0 }
0x1cf8   :  { %2497 = vmatprep.subr.bf16.mxu0 %v2703_v0 }
0x1cfb   :  { %2498 = vmatpush3.bf16.msra.mxu0 %v2979_v50 }
0x1cfc   :  { %2511 = vmatprep.subr.bf16.mxu0 %v2703_v0 }
0x1d66   :  { %v1373_v44 = vpop.permute.xlu0 %1372 }
0x1dc9   :  { %v1358_v35 = vpop.f32.mrb[40].mxu0 }
0x1dca   :  { %v1364_v36 = vadd.f32 %v1358_v35, %v1319_v34  ;;  %v2485_v37 = vpop.f32.mrb[41].mxu0 }
0x1dcb   :  { %v1361_v38 = vpop.f32.mrb[42].mxu0 }
0x1dcc   :  { %v2200_v39 = vmul.f32 -1.442695, %v1364_v36  ;;  %v2486_v40 = vpop.f32.mrb[43].mxu0 }
0x1dce   :  { %2661 = vpow2.f32 %v2200_v39 }
0x1dd8   :  { %v2662_v41 = vpop.eup %2661 }
0x1dd9   :  { %v1368_v42 = vadd.f32 1.0, %v2662_v41 }
0x1ddb   :  { %2663 = vrcp.f32 %v1368_v42 }
0x1de5   :  { %v2664_v43 = vpop.eup %2663 }
0x1de6   :  { %v1375_v45 = vmul.f32 %v2664_v43, %v1373_v44  ;;  %v1429_v57 = vsub.f32 1.0, %v2664_v43 }
0x1de8   :  { %v1376_v46 = vpack.c.bf16 %v1375_v45, %v1375_v45  ;;  %v1430_v59 = vmul.f32 %v1429_v57, %v1317_v32 }
0x1dea   :  { %1378 = vrot.lane.b32.xlu1 %v1376_v46, %s2706_s3 }
0x1e5c   :  { %v1379_v47 = vpop.permute.xlu1 %1378 }
0x1e5d   :  { %2492 = vmatmul.mubr.msk.bf16.vlgmr.msra.gmra.mrb[40].mxu1 %vm129_vm3, %v1379_v47 }
0x1e5e   :  { %2504 = vmatpush3.bf16.msra.mxu1 %v3005_v2  ;;  %2507 = vmatprep.mubr.msk.bf16.mxu1 %vm2704_vm1, %v2703_v0 }
0x1e5f   :  { %2505 = vmatprep.subr.bf16.mxu1 %v2703_v0 }
0x1e62   :  { %2506 = vmatpush3.bf16.msra.mxu1 %v3011_v3 }
0x1e63   :  { %2519 = vmatprep.subr.bf16.mxu1 %v2703_v0 }
0x1f30   :  { %v1417_v48 = vpop.f32.mrb[40].mxu1 }
0x1f31   :  { %1424 = vrot.lane.b32.xlu0 %v1417_v48, %s2707_s4  ;;  %v2493_v51 = vpop.f32.mrb[41].mxu1 }
0x1f32   :  { %v1420_v52 = vpop.f32.mrb[42].mxu1 }
0x1f33   :  { %v2494_v53 = vpop.f32.mrb[43].mxu1 }
0x1fa3   :  { %v1425_v54 = vpop.permute.xlu0 %1424 }
0x1fa4   :  { %v1427_v55 = vadd.f32 %v1425_v54, %v1319_v34 }
0x1fa6   :  { %2665 = vtanh.f32 %v1427_v55 }
0x1fb0   :  { %v2666_v56 = vpop.eup %2665 }
0x1fb1   :  { %1432 = vrot.lane.b32.xlu1 %v2666_v56, %s2707_s4 }
0x2023   :  { %v1433_v58 = vpop.permute.xlu1 %1432 }
0x2024   :  { %v1435_v60 = vmul.f32 %v2664_v43, %v1433_v58  ;;  %v1676_v58 = vld [vmem:[#allocation4 + $0x8] sm:$0x3] }
0x2026   :  { %v1436_v61 = vadd.f32 %v1435_v60, %v1430_v59 }
0x2028   :  { %1437 = vst.msk [vmem:[%s3186_s9 + $0x2] sm:$0x3] %vm37_vm0, %v1436_v61  ;;  %v1439_v62 = vpack.c.bf16 %v1436_v61, %v1436_v61  ;;  %1491 = vrot.lane.b32.xlu0 %v1436_v61, %s2705_s0 }
0x202a   :  { %2500 = vmatmul.mubr.msk.bf16.vlgmr.msra.gmra.mrb[44].mxu0 %vm129_vm3, %v1439_v62 }
0x202b   :  { %2512 = vmatpush3.bf16.msra.mxu0 %v2973_v49  ;;  %2515 = vmatprep.mubr.msk.bf16.mxu0 %vm2704_vm1, %v2703_v0 }
0x202c   :  { %2513 = vmatprep.subr.bf16.mxu0 %v2703_v0 }
0x202f   :  { %2514 = vmatpush3.bf16.msra.mxu0 %v2979_v50 }
0x2030   :  { %2527 = vmatprep.subr.bf16.mxu0 %v2703_v0 }
0x209a   :  { %v1492_v6 = vpop.permute.xlu0 %1491 }
0x20fd   :  { %v1477_v1 = vpop.f32.mrb[44].mxu0 }
0x20fe   :  { %v1483_v4 = vadd.f32 %v1477_v1, %v1438_v63  ;;  %v2501_v7 = vpop.f32.mrb[45].mxu0 }
0x20ff   :  { %v1480_v8 = vpop.f32.mrb[46].mxu0 }
0x2100   :  { %v2203_v11 = vmul.f32 -1.442695, %v1483_v4  ;;  %v2502_v5 = vpop.f32.mrb[47].mxu0 }
0x2102   :  { %2667 = vpow2.f32 %v2203_v11 }
0x210c   :  { %v2668_v12 = vpop.eup %2667 }
0x210d   :  { %v1487_v13 = vadd.f32 1.0, %v2668_v12 }
0x210f   :  { %2669 = vrcp.f32 %v1487_v13 }
0x2119   :  { %v2670_v14 = vpop.eup %2669 }
0x211a   :  { %v1494_v15 = vmul.f32 %v2670_v14, %v1492_v6  ;;  %v1548_v24 = vsub.f32 1.0, %v2670_v14 }
0x211c   :  { %v1495_v16 = vpack.c.bf16 %v1494_v15, %v1494_v15  ;;  %v1549_v10 = vmul.f32 %v1548_v24, %v1436_v61 }
0x211e   :  { %1497 = vrot.lane.b32.xlu1 %v1495_v16, %s2706_s3 }
0x2190   :  { %v1498_v17 = vpop.permute.xlu1 %1497 }
0x2191   :  { %2508 = vmatmul.mubr.msk.bf16.vlgmr.msra.gmra.mrb[44].mxu1 %vm129_vm3, %v1498_v17 }
0x2192   :  { %2520 = vmatpush3.bf16.msra.mxu1 %v3005_v2  ;;  %2523 = vmatprep.mubr.msk.bf16.mxu1 %vm2704_vm1, %v2703_v0 }
0x2193   :  { %2521 = vmatprep.subr.bf16.mxu1 %v2703_v0 }
0x2196   :  { %2522 = vmatpush3.bf16.msra.mxu1 %v3011_v3 }
0x2197   :  { %2535 = vmatprep.subr.bf16.mxu1 %v2703_v0 }
0x2264   :  { %v1536_v18 = vpop.f32.mrb[44].mxu1 }
0x2265   :  { %1543 = vrot.lane.b32.xlu0 %v1536_v18, %s2707_s4  ;;  %v2509_v19 = vpop.f32.mrb[45].mxu1 }
0x2266   :  { %v1539_v20 = vpop.f32.mrb[46].mxu1 }
0x2267   :  { %v2510_v21 = vpop.f32.mrb[47].mxu1 }
0x22d7   :  { %v1544_v9 = vpop.permute.xlu0 %1543 }
0x22d8   :  { %v1546_v22 = vadd.f32 %v1544_v9, %v1438_v63 }
0x22da   :  { %2671 = vtanh.f32 %v1546_v22 }
0x22e4   :  { %v2672_v23 = vpop.eup %2671 }
0x22e5   :  { %1551 = vrot.lane.b32.xlu1 %v2672_v23, %s2707_s4 }
0x2357   :  { %v1552_v25 = vpop.permute.xlu1 %1551 }
0x2358   :  { %v1554_v26 = vmul.f32 %v2670_v14, %v1552_v25  ;;  %v1795_v25 = vld [vmem:[#allocation4 + $0xa] sm:$0x3] }
0x235a   :  { %v1555_v27 = vadd.f32 %v1554_v26, %v1549_v10 }
0x235c   :  { %1556 = vst.msk [vmem:[%s3186_s9 + $0x4] sm:$0x3] %vm37_vm0, %v1555_v27  ;;  %v1558_v28 = vpack.c.bf16 %v1555_v27, %v1555_v27  ;;  %1610 = vrot.lane.b32.xlu0 %v1555_v27, %s2705_s0 }
0x235e   :  { %2516 = vmatmul.mubr.msk.bf16.vlgmr.msra.gmra.mrb[48].mxu0 %vm129_vm3, %v1558_v28 }
0x235f   :  { %2528 = vmatpush3.bf16.msra.mxu0 %v2973_v49  ;;  %2531 = vmatprep.mubr.msk.bf16.mxu0 %vm2704_vm1, %v2703_v0 }
0x2360   :  { %2529 = vmatprep.subr.bf16.mxu0 %v2703_v0 }
0x2363   :  { %2530 = vmatpush3.bf16.msra.mxu0 %v2979_v50 }
0x2364   :  { %2543 = vmatprep.subr.bf16.mxu0 %v2703_v0 }
0x23ce   :  { %v1611_v39 = vpop.permute.xlu0 %1610 }
0x2431   :  { %v1596_v30 = vpop.f32.mrb[48].mxu0 }
0x2432   :  { %v1602_v31 = vadd.f32 %v1596_v30, %v1557_v29  ;;  %v2517_v32 = vpop.f32.mrb[49].mxu0 }
0x2433   :  { %v1599_v33 = vpop.f32.mrb[50].mxu0 }
0x2434   :  { %v2206_v34 = vmul.f32 -1.442695, %v1602_v31  ;;  %v2518_v35 = vpop.f32.mrb[51].mxu0 }
0x2436   :  { %2673 = vpow2.f32 %v2206_v34 }
0x2440   :  { %v2674_v36 = vpop.eup %2673 }
0x2441   :  { %v1606_v37 = vadd.f32 1.0, %v2674_v36 }
0x2443   :  { %2675 = vrcp.f32 %v1606_v37 }
0x244d   :  { %v2676_v38 = vpop.eup %2675 }
0x244e   :  { %v1613_v40 = vmul.f32 %v2676_v38, %v1611_v39  ;;  %v1667_v52 = vsub.f32 1.0, %v2676_v38 }
0x2450   :  { %v1614_v41 = vpack.c.bf16 %v1613_v40, %v1613_v40  ;;  %v1668_v54 = vmul.f32 %v1667_v52, %v1555_v27 }
0x2452   :  { %1616 = vrot.lane.b32.xlu1 %v1614_v41, %s2706_s3 }
0x24c4   :  { %v1617_v42 = vpop.permute.xlu1 %1616 }
0x24c5   :  { %2524 = vmatmul.mubr.msk.bf16.vlgmr.msra.gmra.mrb[48].mxu1 %vm129_vm3, %v1617_v42 }
0x24c6   :  { %2536 = vmatpush3.bf16.msra.mxu1 %v3005_v2  ;;  %2539 = vmatprep.mubr.msk.bf16.mxu1 %vm2704_vm1, %v2703_v0 }
0x24c7   :  { %2537 = vmatprep.subr.bf16.mxu1 %v2703_v0 }
0x24ca   :  { %2538 = vmatpush3.bf16.msra.mxu1 %v3011_v3 }
0x24cb   :  { %2551 = vmatprep.subr.bf16.mxu1 %v2703_v0 }
0x2598   :  { %v1655_v43 = vpop.f32.mrb[48].mxu1 }
0x2599   :  { %1662 = vrot.lane.b32.xlu0 %v1655_v43, %s2707_s4  ;;  %v2525_v44 = vpop.f32.mrb[49].mxu1 }
0x259a   :  { %v1658_v45 = vpop.f32.mrb[50].mxu1 }
0x259b   :  { %v2526_v46 = vpop.f32.mrb[51].mxu1 }
0x260b   :  { %v1663_v47 = vpop.permute.xlu0 %1662 }
0x260c   :  { %v1665_v48 = vadd.f32 %v1663_v47, %v1557_v29 }
0x260e   :  { %2677 = vtanh.f32 %v1665_v48 }
0x2618   :  { %v2678_v51 = vpop.eup %2677 }
0x2619   :  { %1670 = vrot.lane.b32.xlu1 %v2678_v51, %s2707_s4 }
0x268b   :  { %v1671_v53 = vpop.permute.xlu1 %1670 }
0x268c   :  { %v1673_v55 = vmul.f32 %v2676_v38, %v1671_v53  ;;  %v1914_v53 = vld [vmem:[#allocation4 + $0xc] sm:$0x3] }
0x268e   :  { %v1674_v56 = vadd.f32 %v1673_v55, %v1668_v54 }
0x2690   :  { %1675 = vst.msk [vmem:[%s3186_s9 + $0x6] sm:$0x3] %vm37_vm0, %v1674_v56  ;;  %v1677_v57 = vpack.c.bf16 %v1674_v56, %v1674_v56  ;;  %1729 = vrot.lane.b32.xlu0 %v1674_v56, %s2705_s0 }
0x2692   :  { %2532 = vmatmul.mubr.msk.bf16.vlgmr.msra.gmra.mrb[52].mxu0 %vm129_vm3, %v1677_v57 }
0x2693   :  { %2544 = vmatpush3.bf16.msra.mxu0 %v2973_v49  ;;  %2547 = vmatprep.mubr.msk.bf16.mxu0 %vm2704_vm1, %v2703_v0 }
0x2694   :  { %2545 = vmatprep.subr.bf16.mxu0 %v2703_v0 }
0x2697   :  { %2546 = vmatpush3.bf16.msra.mxu0 %v2979_v50 }
0x2698   :  { %2559 = vmatprep.subr.bf16.mxu0 %v2703_v0 }
0x2702   :  { %v1730_v11 = vpop.permute.xlu0 %1729 }
0x2765   :  { %v1715_v59 = vpop.f32.mrb[52].mxu0 }
0x2766   :  { %v1721_v60 = vadd.f32 %v1715_v59, %v1676_v58  ;;  %v2533_v61 = vpop.f32.mrb[53].mxu0 }
0x2767   :  { %v1718_v62 = vpop.f32.mrb[54].mxu0 }
0x2768   :  { %v2209_v63 = vmul.f32 -1.442695, %v1721_v60  ;;  %v2534_v1 = vpop.f32.mrb[55].mxu0 }
0x276a   :  { %2679 = vpow2.f32 %v2209_v63 }
0x2774   :  { %v2680_v4 = vpop.eup %2679 }
0x2775   :  { %v1725_v7 = vadd.f32 1.0, %v2680_v4 }
0x2777   :  { %2681 = vrcp.f32 %v1725_v7 }
0x2781   :  { %v2682_v8 = vpop.eup %2681 }
0x2782   :  { %v1732_v5 = vmul.f32 %v2682_v8, %v1730_v11  ;;  %v1786_v20 = vsub.f32 1.0, %v2682_v8 }
0x2784   :  { %v1733_v12 = vpack.c.bf16 %v1732_v5, %v1732_v5  ;;  %v1787_v9 = vmul.f32 %v1786_v20, %v1674_v56 }
0x2786   :  { %1735 = vrot.lane.b32.xlu1 %v1733_v12, %s2706_s3 }
0x27f8   :  { %v1736_v13 = vpop.permute.xlu1 %1735 }
0x27f9   :  { %2540 = vmatmul.mubr.msk.bf16.vlgmr.msra.gmra.mrb[52].mxu1 %vm129_vm3, %v1736_v13 }
0x27fa   :  { %2552 = vmatpush3.bf16.msra.mxu1 %v3005_v2  ;;  %2555 = vmatprep.mubr.msk.bf16.mxu1 %vm2704_vm1, %v2703_v0 }
0x27fb   :  { %2553 = vmatprep.subr.bf16.mxu1 %v2703_v0 }
0x27fe   :  { %2554 = vmatpush3.bf16.msra.mxu1 %v3011_v3 }
0x27ff   :  { %2567 = vmatprep.subr.bf16.mxu1 %v2703_v0 }
0x28cc   :  { %v1774_v14 = vpop.f32.mrb[52].mxu1 }
0x28cd   :  { %1781 = vrot.lane.b32.xlu0 %v1774_v14, %s2707_s4  ;;  %v2541_v6 = vpop.f32.mrb[53].mxu1 }
0x28ce   :  { %v1777_v15 = vpop.f32.mrb[54].mxu1 }
0x28cf   :  { %v2542_v16 = vpop.f32.mrb[55].mxu1 }
0x293f   :  { %v1782_v17 = vpop.permute.xlu0 %1781 }
0x2940   :  { %v1784_v18 = vadd.f32 %v1782_v17, %v1676_v58 }
0x2942   :  { %2683 = vtanh.f32 %v1784_v18 }
0x294c   :  { %v2684_v19 = vpop.eup %2683 }
0x294d   :  { %1789 = vrot.lane.b32.xlu1 %v2684_v19, %s2707_s4 }
0x29bf   :  { %v1790_v21 = vpop.permute.xlu1 %1789 }
0x29c0   :  { %v1792_v22 = vmul.f32 %v2682_v8, %v1790_v21 }
0x29c2   :  { %v1793_v23 = vadd.f32 %v1792_v22, %v1787_v9 }
0x29c4   :  { %1794 = vst.msk [vmem:[%s3186_s9 + $0x8] sm:$0x3] %vm37_vm0, %v1793_v23  ;;  %v1796_v24 = vpack.c.bf16 %v1793_v23, %v1793_v23  ;;  %1848 = vrot.lane.b32.xlu0 %v1793_v23, %s2705_s0 }
0x29c6   :  { %2548 = vmatmul.mubr.msk.bf16.vlgmr.msra.gmra.mrb[56].mxu0 %vm129_vm3, %v1796_v24 }
0x29c7   :  { %2560 = vmatpush3.bf16.msra.mxu0 %v2973_v49  ;;  %2563 = vmatprep.mubr.msk.bf16.mxu0 %vm2704_vm1, %v2703_v0 }
0x29c8   :  { %2561 = vmatprep.subr.bf16.mxu0 %v2703_v0 }
0x29cb   :  { %2562 = vmatpush3.bf16.msra.mxu0 %v2979_v50 }
0x29cc   :  { %2575 = vmatprep.subr.bf16.mxu0 %v2703_v0 }
0x2a36   :  { %v1849_v34 = vpop.permute.xlu0 %1848 }
0x2a99   :  { %v1834_v10 = vpop.f32.mrb[56].mxu0 }
0x2a9a   :  { %v1840_v26 = vadd.f32 %v1834_v10, %v1795_v25  ;;  %v2549_v27 = vpop.f32.mrb[57].mxu0 }
0x2a9b   :  { %v1837_v28 = vpop.f32.mrb[58].mxu0 }
0x2a9c   :  { %v2212_v29 = vmul.f32 -1.442695, %v1840_v26  ;;  %v2550_v30 = vpop.f32.mrb[59].mxu0 }
0x2a9e   :  { %2685 = vpow2.f32 %v2212_v29 }
0x2aa8   :  { %v2686_v31 = vpop.eup %2685 }
0x2aa9   :  { %v1844_v32 = vadd.f32 1.0, %v2686_v31 }
0x2aab   :  { %2687 = vrcp.f32 %v1844_v32 }
0x2ab5   :  { %v2688_v33 = vpop.eup %2687 }
0x2ab6   :  { %v1851_v35 = vmul.f32 %v2688_v33, %v1849_v34  ;;  %v1905_v45 = vsub.f32 1.0, %v2688_v33 }
0x2ab8   :  { %v1852_v36 = vpack.c.bf16 %v1851_v35, %v1851_v35  ;;  %v1906_v47 = vmul.f32 %v1905_v45, %v1793_v23 }
0x2aba   :  { %1854 = vrot.lane.b32.xlu1 %v1852_v36, %s2706_s3 }
0x2b2c   :  { %v1855_v37 = vpop.permute.xlu1 %1854 }
0x2b2d   :  { %2556 = vmatmul.mubr.msk.bf16.vlgmr.msra.gmra.mrb[56].mxu1 %vm129_vm3, %v1855_v37 }
0x2b2e   :  { %2568 = vmatpush3.bf16.msra.mxu1 %v3005_v2  ;;  %2571 = vmatprep.mubr.msk.bf16.mxu1 %vm2704_vm1, %v2703_v0 }
0x2b2f   :  { %2569 = vmatprep.subr.bf16.mxu1 %v2703_v0 }
0x2b32   :  { %2570 = vmatpush3.bf16.msra.mxu1 %v3011_v3 }
0x2b33   :  { %2583 = vmatprep.subr.bf16.mxu1 %v2703_v0 }
0x2c00   :  { %v1893_v38 = vpop.f32.mrb[56].mxu1 }
0x2c01   :  { %1900 = vrot.lane.b32.xlu0 %v1893_v38, %s2707_s4  ;;  %v2557_v39 = vpop.f32.mrb[57].mxu1 }
0x2c02   :  { %v1896_v40 = vpop.f32.mrb[58].mxu1 }
0x2c03   :  { %v2558_v41 = vpop.f32.mrb[59].mxu1 }
0x2c73   :  { %v1901_v42 = vpop.permute.xlu0 %1900 }
0x2c74   :  { %v1903_v43 = vadd.f32 %v1901_v42, %v1795_v25 }
0x2c76   :  { %2689 = vtanh.f32 %v1903_v43 }
0x2c80   :  { %v2690_v44 = vpop.eup %2689 }
0x2c81   :  { %1908 = vrot.lane.b32.xlu1 %v2690_v44, %s2707_s4 }
0x2cf3   :  { %v1909_v46 = vpop.permute.xlu1 %1908 }
0x2cf4   :  { %v1911_v48 = vmul.f32 %v2688_v33, %v1909_v46 }
0x2cf6   :  { %v1912_v51 = vadd.f32 %v1911_v48, %v1906_v47 }
0x2cf8   :  { %1913 = vst.msk [vmem:[%s3186_s9 + $0xa] sm:$0x3] %vm37_vm0, %v1912_v51  ;;  %v1915_v52 = vpack.c.bf16 %v1912_v51, %v1912_v51  ;;  %1967 = vrot.lane.b32.xlu0 %v1912_v51, %s2705_s0 }
0x2cfa   :  { %2564 = vmatmul.mubr.msk.bf16.vlgmr.msra.gmra.mrb[60].mxu0 %vm129_vm3, %v1915_v52 }
0x2cfb   :  { %2576 = vmatpush3.bf16.msra.mxu0 %v2973_v49  ;;  %2579 = vmatprep.mubr.msk.bf16.mxu0 %vm2704_vm1, %v2703_v0 }
0x2cfc   :  { %2577 = vmatprep.subr.bf16.mxu0 %v2703_v0 }
0x2cff   :  { %2578 = vmatpush3.bf16.msra.mxu0 %v2979_v50 }
0x2d6a   :  { %v1968_v49 = vpop.permute.xlu0 %1967 }
0x2dcd   :  { %v1953_v54 = vpop.f32.mrb[60].mxu0 }
0x2dce   :  { %v1959_v55 = vadd.f32 %v1953_v54, %v1914_v53  ;;  %v2565_v56 = vpop.f32.mrb[61].mxu0 }
0x2dcf   :  { %v1956_v57 = vpop.f32.mrb[62].mxu0 }
0x2dd0   :  { %v2215_v58 = vmul.f32 -1.442695, %v1959_v55  ;;  %v2566_v59 = vpop.f32.mrb[63].mxu0 }
0x2dd2   :  { %2691 = vpow2.f32 %v2215_v58 }
0x2ddc   :  { %v2692_v60 = vpop.eup %2691 }
0x2ddd   :  { %v1963_v61 = vadd.f32 1.0, %v2692_v60 }
0x2ddf   :  { %2693 = vrcp.f32 %v1963_v61 }
0x2de9   :  { %v2694_v62 = vpop.eup %2693 }
0x2dea   :  { %v1970_v63 = vmul.f32 %v2694_v62, %v1968_v49 }
0x2dec   :  { %v1971_v1 = vpack.c.bf16 %v1970_v63, %v1970_v63 }
0x2dee   :  { %1973 = vrot.lane.b32.xlu1 %v1971_v1, %s2706_s3 }
0x2e60   :  { %v1974_v4 = vpop.permute.xlu1 %1973 }
0x2e61   :  { %2572 = vmatmul.mubr.msk.bf16.vlgmr.msra.gmra.mrb[60].mxu1 %vm129_vm3, %v1974_v4 }
0x2e62   :  { %2584 = vmatpush3.bf16.msra.mxu1 %v3005_v2  ;;  %2587 = vmatprep.mubr.msk.bf16.mxu1 %vm2704_vm1, %v2703_v0  ;;  %v2024_v2 = vsub.f32 1.0, %v2694_v62 }
0x2e63   :  { %2585 = vmatprep.subr.bf16.mxu1 %v2703_v0 }
0x2e64   :  { %v2025_v6 = vmul.f32 %v2024_v2, %v1912_v51 }
0x2e66   :  { %2586 = vmatpush3.bf16.msra.mxu1 %v3011_v3  ;;  %v2033_v3 = vld [vmem:[#allocation4 + $0xe] sm:$0x3] }
0x2f34   :  { %v2012_v50 = vpop.f32.mrb[60].mxu1 }
0x2f35   :  { %2019 = vrot.lane.b32.xlu0 %v2012_v50, %s2707_s4  ;;  %v2573_v7 = vpop.f32.mrb[61].mxu1 }
0x2f36   :  { %v2015_v8 = vpop.f32.mrb[62].mxu1 }
0x2f37   :  { %v2574_v11 = vpop.f32.mrb[63].mxu1 }
0x2fa7   :  { %v2020_v5 = vpop.permute.xlu0 %2019 }
0x2fa8   :  { %v2022_v12 = vadd.f32 %v2020_v5, %v1914_v53 }
0x2faa   :  { %2695 = vtanh.f32 %v2022_v12 }
0x2fb4   :  { %v2696_v13 = vpop.eup %2695 }
0x2fb5   :  { %2027 = vrot.lane.b32.xlu1 %v2696_v13, %s2707_s4 }
0x3027   :  { %v2028_v14 = vpop.permute.xlu1 %2027 }
0x3028   :  { %v2030_v15 = vmul.f32 %v2694_v62, %v2028_v14 }
0x302a   :  { %v2031_v16 = vadd.f32 %v2030_v15, %v2025_v6 }
0x302c   :  { %2032 = vst.msk [vmem:[%s3186_s9 + $0xc] sm:$0x3] %vm37_vm0, %v2031_v16  ;;  %v2034_v0 = vpack.c.bf16 %v2031_v16, %v2031_v16  ;;  %2086 = vrot.lane.b32.xlu0 %v2031_v16, %s2705_s0 }
0x302e   :  { %2580 = vmatmul.mubr.msk.bf16.vlgmr.msra.gmra.mrb[64].mxu0 %vm129_vm3, %v2034_v0 }
0x309e   :  { %v2087_v25 = vpop.permute.xlu0 %2086 }
0x3101   :  { %v2072_v17 = vpop.f32.mrb[64].mxu0 }
0x3102   :  { %v2078_v18 = vadd.f32 %v2072_v17, %v2033_v3  ;;  %v2581_v19 = vpop.f32.mrb[65].mxu0 }
0x3103   :  { %v2075_v20 = vpop.f32.mrb[66].mxu0 }
0x3104   :  { %v2218_v21 = vmul.f32 -1.442695, %v2078_v18  ;;  %v2582_v9 = vpop.f32.mrb[67].mxu0 }
0x3106   :  { %2697 = vpow2.f32 %v2218_v21 }
0x3110   :  { %v2698_v22 = vpop.eup %2697 }
0x3111   :  { %v2082_v23 = vadd.f32 1.0, %v2698_v22 }
0x3113   :  { %2699 = vrcp.f32 %v2082_v23 }
0x311d   :  { %v2700_v24 = vpop.eup %2699 }
0x311e   :  { %v2089_v10 = vmul.f32 %v2700_v24, %v2087_v25  ;;  %v2143_v35 = vsub.f32 1.0, %v2700_v24 }
0x3120   :  { %v2090_v26 = vpack.c.bf16 %v2089_v10, %v2089_v10  ;;  %v2144_v37 = vmul.f32 %v2143_v35, %v2031_v16 }
0x3122   :  { %2092 = vrot.lane.b32.xlu1 %v2090_v26, %s2706_s3 }
0x3194   :  { %v2093_v27 = vpop.permute.xlu1 %2092 }
0x3195   :  { %2588 = vmatmul.mubr.msk.bf16.vlgmr.msra.gmra.mrb[64].mxu1 %vm129_vm3, %v2093_v27 }
0x3268   :  { %v2131_v28 = vpop.f32.mrb[64].mxu1 }
0x3269   :  { %2138 = vrot.lane.b32.xlu0 %v2131_v28, %s2707_s4  ;;  %v2589_v29 = vpop.f32.mrb[65].mxu1 }
0x326a   :  { %v2134_v30 = vpop.f32.mrb[66].mxu1 }
0x326b   :  { %v2590_v31 = vpop.f32.mrb[67].mxu1 }
0x32db   :  { %v2139_v32 = vpop.permute.xlu0 %2138 }
0x32dc   :  { %v2141_v33 = vadd.f32 %v2139_v32, %v2033_v3 }
0x32de   :  { %2701 = vtanh.f32 %v2141_v33 }
0x32e8   :  { %v2702_v34 = vpop.eup %2701 }
0x32e9   :  { %2146 = vrot.lane.b32.xlu1 %v2702_v34, %s2707_s4 }
0x335b   :  { %v2147_v36 = vpop.permute.xlu1 %2146 }
0x335c   :  { %v2149_v38 = vmul.f32 %v2700_v24, %v2147_v36 }
0x335e   :  { %v2150_v39 = vadd.f32 %v2149_v38, %v2144_v37 }
0x3360   :  { %2151 = vst.msk [vmem:[%s3186_s9 + $0xe] sm:$0x3] %vm37_vm0, %v2150_v39  ;;  %2152 = vst.msk [vmem:[#allocation2 + $0x2] sm:$0x3] %vm37_vm0, %v2150_v39 }

</bundles_post_ra>
